<compile_context>
chip_gen: v7x
topology: tpu7x:2x2x1
jax: 0.10.0
libtpu: 0.0.40
codegen_flags: <defaults>
</compile_context>

<pallas_src>
import functools

import numpy as np
import jax
import jax.numpy as jnp
from jax import lax
from jax.experimental import pallas as pl
from jax.experimental.pallas import tpu as pltpu


VMEM_LIMIT = 32 * 1024 * 1024  # scoped-VMEM request; conservative for v5e/v6e/v7x


# ---------------------------------------------------------------- tile picking

def _pick_row_tile(rows, bytes_per_row, max_rows=512):
    """Largest multiple-of-8 divisor of `rows` that is <= max_rows and fits a
    conservative slice of the VMEM budget (inputs/outputs are double-buffered)."""
    cap = min(max_rows, max(8, (VMEM_LIMIT // 4) // max(bytes_per_row, 1)))
    best = None
    t = 8
    while t <= min(rows, cap):
        if rows % t == 0:
            best = t
        t += 8
    return best if best is not None else rows


def _compiler_params():
    return pltpu.CompilerParams(
        dimension_semantics=("parallel",),
        vmem_limit_bytes=VMEM_LIMIT,
    )


# ---------------------------------------------------------------- Pallas kernels

def _upconcat_kernel(xu_ref, fd_ref, mu_ref, mf_ref, b_ref, o_ref):
    # Fused ConvTranspose2d(k=2,s=2) + bias + channel concat with from_down.
    # xu_ref: (TU, Wu*Cin)          rows of from_up
    # fd_ref: (TU, 2*Wd*Cout)       matching pair of from_down rows
    # mu_ref: (Wu*Cin, 2*Wd*2Cout)  banded up-conv weights (depth-to-space baked in)
    # mf_ref: (2*Wd*Cout, 2*Wd*2Cout) 0/1 scatter placing from_down channels
    # b_ref : (1, 2*Wd*2Cout)
    # o_ref : (TU, 2*Wd*2Cout)      two merged output rows per from_up row (lane-dense)
    o_ref[...] = (
        jnp.dot(xu_ref[...], mu_ref[...], preferred_element_type=jnp.float32)
        + jnp.dot(fd_ref[...], mf_ref[...], preferred_element_type=jnp.float32)
        + b_ref[...]
    )


def _conv3x3_rows_kernel(blocks_per_image, halo_rows,
                         xc_ref, xt_ref, xb_ref, w_ref, b_ref, o_ref):
    # 3x3 conv (pad=1) + bias + ReLU over a block of image rows.
    # xc_ref: (TH, W*Cin)   rows handled by this grid step
    # xt_ref: (HB, W*Cin)   block containing the halo row just above (use last row)
    # xb_ref: (HB, W*Cin)   block containing the halo row just below (use first row)
    # w_ref : (3, W*Cin, W*Cout)  banded row weights (W zero-padding baked in)
    # b_ref : (1, W*Cout)
    # o_ref : (TH, W*Cout)
    g = pl.program_id(0)
    gi = g % blocks_per_image
    not_top = jnp.where(gi == 0, 0.0, 1.0)                       # zero halo at image top
    not_bot = jnp.where(gi == blocks_per_image - 1, 0.0, 1.0)    # zero halo at image bottom

    xc = xc_ref[...]                                             # (TH, K)
    top_row = xt_ref[halo_rows - 1:halo_rows, :] * not_top       # (1, K)
    bot_row = xb_ref[0:1, :] * not_bot                           # (1, K)

    x_prev = jnp.concatenate([top_row, xc[:-1, :]], axis=0)      # image rows y-1
    x_next = jnp.concatenate([xc[1:, :], bot_row], axis=0)       # image rows y+1

    acc = jnp.dot(x_prev, w_ref[0], preferred_element_type=jnp.float32)
    acc = acc + jnp.dot(xc, w_ref[1], preferred_element_type=jnp.float32)
    acc = acc + jnp.dot(x_next, w_ref[2], preferred_element_type=jnp.float32)
    o_ref[...] = jnp.maximum(acc + b_ref[...], 0.0)


# ---------------------------------------------------------------- weight builders

def _build_upconcat_mats(wt, bt, Wu, Cin, Cout):
    """ConvTranspose2d(k=2,s=2) weights (Cin, Cout, 2, 2) -> banded matrices mapping a
    flattened from_up row to a *pair* of merged output rows in (row, Wd*2Cout) layout,
    with the channel-concat placement baked in."""
    Wd, C2 = 2 * Wu, 2 * Cout
    wt = wt.astype(jnp.float32)
    x_idx = jnp.arange(Wu)

    mu = jnp.zeros((Wu, Cin, 2, Wd, C2), jnp.float32)
    for di in range(2):
        for dj in range(2):
            sel = jnp.zeros((Wu, Wd), jnp.float32).at[x_idx, 2 * x_idx + dj].set(1.0)
            contrib = sel[:, None, :, None] * wt[:, :, di, dj][None, :, None, :]
            mu = mu.at[:, :, di, :, :Cout].add(contrib)
    mu = mu.reshape(Wu * Cin, 2 * Wd * C2)

    eye2 = jnp.eye(2, dtype=jnp.float32)
    eyeW = jnp.eye(Wd, dtype=jnp.float32)
    ch = jnp.zeros((Cout, C2), jnp.float32).at[
        jnp.arange(Cout), Cout + jnp.arange(Cout)].set(1.0)
    mf = (eye2[:, None, None, :, None, None]
          * eyeW[None, :, None, None, :, None]
          * ch[None, None, :, None, None, :])
    mf = mf.reshape(2 * Wd * Cout, 2 * Wd * C2)

    b_pix = jnp.concatenate([bt.astype(jnp.float32), jnp.zeros((Cout,), jnp.float32)])
    b_row = jnp.tile(b_pix, 2 * Wd).reshape(1, 2 * Wd * C2)
    return mu, mf, b_row


def _build_conv_row_mats(w_oihw, b, Wd):
    """Conv2d weight (Cout, Cin, 3, 3) -> (3, Wd*Cin, Wd*Cout) banded row weights.
    The W-direction zero-padding is encoded as missing (zero) blocks."""
    Cout, Cin = w_oihw.shape[0], w_oihw.shape[1]
    w = jnp.transpose(w_oihw, (2, 3, 1, 0)).astype(jnp.float32)  # (3,3,Cin,Cout) [dy,dx,c,o]
    mats = []
    for dy in range(3):
        m = jnp.zeros((Wd, Cin, Wd, Cout), jnp.float32)
        for dx in range(3):
            shift = dx - 1
            sel = jnp.eye(Wd, Wd, k=-shift, dtype=jnp.float32)   # sel[i,j]=1 iff i==j+shift
            m = m + sel[:, None, :, None] * w[dy, dx][None, :, None, :]
        mats.append(m.reshape(Wd * Cin, Wd * Cout))
    wrow = jnp.stack(mats, axis=0)
    brow = jnp.tile(b.astype(jnp.float32), Wd).reshape(1, Wd * Cout)
    return wrow, brow


# ---------------------------------------------------------------- pallas_call wrappers

def _upconcat_call(fu2, fd2, mu, mf, brow, row_tile=None):
    Ru, Ku = fu2.shape
    Kf = fd2.shape[1]
    No = mu.shape[1]
    bytes_per_row = 4 * 2 * (Ku + Kf + No)
    TU = row_tile if row_tile is not None else _pick_row_tile(Ru, bytes_per_row)
    assert Ru % TU == 0, "row_tile must divide the number of from_up rows"
    G = Ru // TU
    return pl.pallas_call(
        _upconcat_kernel,
        out_shape=jax.ShapeDtypeStruct((Ru, No), jnp.float32),
        grid=(G,),
        in_specs=[
            pl.BlockSpec((TU, Ku), lambda g: (g, 0)),
            pl.BlockSpec((TU, Kf), lambda g: (g, 0)),
            pl.BlockSpec((Ku, No), lambda g: (0, 0)),
            pl.BlockSpec((Kf, No), lambda g: (0, 0)),
            pl.BlockSpec((1, No), lambda g: (0, 0)),
        ],
        out_specs=pl.BlockSpec((TU, No), lambda g: (g, 0)),
        compiler_params=_compiler_params(),
    )(fu2, fd2, mu, mf, brow)


def _conv3x3_rows_call(x2d, wrow, brow, H, row_tile=None):
    R, K = x2d.shape
    Nw = wrow.shape[2]
    assert R % H == 0
    bytes_per_row = 4 * 2 * (K + Nw)
    TH = row_tile if row_tile is not None else _pick_row_tile(H, bytes_per_row)
    assert H % TH == 0, "row_tile must divide the image height"
    G = R // TH
    blocks_per_image = H // TH

    if TH % 8 == 0:
        # Halo rows come from aligned 8-row blocks adjacent to the center block:
        # halo above = last row of block (g*TH-8 .. g*TH), halo below = first row of
        # block starting at g*TH+TH.  Clamped at array edges, masked at image edges.
        HB = 8
        thb = TH // 8
        nhb = R // 8
        top_map = lambda g: (jnp.maximum(g * thb - 1, 0), 0)
        bot_map = lambda g: (jnp.minimum(g * thb + thb, nhb - 1), 0)
    else:
        # Fallback: reuse whole neighbour blocks as halo sources.
        HB = TH
        top_map = lambda g: (jnp.maximum(g - 1, 0), 0)
        bot_map = lambda g: (jnp.minimum(g + 1, G - 1), 0)

    kern = functools.partial(_conv3x3_rows_kernel, blocks_per_image, HB)
    return pl.pallas_call(
        kern,
        out_shape=jax.ShapeDtypeStruct((R, Nw), jnp.float32),
        grid=(G,),
        in_specs=[
            pl.BlockSpec((TH, K), lambda g: (g, 0)),   # center rows
            pl.BlockSpec((HB, K), top_map),            # halo above
            pl.BlockSpec((HB, K), bot_map),            # halo below
            pl.BlockSpec((3, K, Nw), lambda g: (0, 0, 0)),
            pl.BlockSpec((1, Nw), lambda g: (0, 0)),
        ],
        out_specs=pl.BlockSpec((TH, Nw), lambda g: (g, 0)),
        compiler_params=_compiler_params(),
    )(x2d, x2d, x2d, wrow, brow)


# ---------------------------------------------------------------- forward

def upconv_forward(from_down_nchw, from_up_nchw, params, row_tile=None):
    N, _, Hd, Wd = from_down_nchw.shape
    _, Cin, Hu, Wu = from_up_nchw.shape
    Cout = params["wt"].shape[1]
    C2 = 2 * Cout

    # NCHW -> NHWC at the PyTorch boundary, then free reshapes to row layouts.
    fd = jnp.transpose(from_down_nchw, (0, 2, 3, 1)).astype(jnp.float32)
    fu = jnp.transpose(from_up_nchw, (0, 2, 3, 1)).astype(jnp.float32)
    fu2 = fu.reshape(N * Hu, Wu * Cin)          # one from_up image row per matrix row
    fd2 = fd.reshape(N * Hu, 2 * Wd * Cout)     # matching pair of from_down rows

    # Fused upconv2x2 + bias + depth-to-space + channel concat.
    mu, mf, b0 = _build_upconcat_mats(params["wt"], params["bt"], Wu, Cin, Cout)
    merged2 = _upconcat_call(fu2, fd2, mu, mf, b0, row_tile=row_tile)   # (N*Hu, 2*Wd*C2)
    x = merged2.reshape(N * Hd, Wd * C2)        # (rows, W*channels) layout, lane-dense

    # conv1 + ReLU, conv2 + ReLU (banded row-matmul formulation, in-kernel halos).
    w1row, b1row = _build_conv_row_mats(params["w1"], params["b1"], Wd)
    x = _conv3x3_rows_call(x, w1row, b1row, H=Hd, row_tile=row_tile)    # (N*Hd, Wd*Cout)
    w2row, b2row = _build_conv_row_mats(params["w2"], params["b2"], Wd)
    x = _conv3x3_rows_call(x, w2row, b2row, H=Hd, row_tile=row_tile)    # (N*Hd, Wd*Cout)

    out = x.reshape(N, Hd, Wd, Cout)
    return jnp.transpose(out, (0, 3, 1, 2))     # back to NCHW


# ---------------------------------------------------------------- pure-JAX reference

def ref_forward(from_down, from_up, p):
    wt, bt = p["wt"], p["bt"]
    N, Cin, H, W = from_up.shape
    Cout = wt.shape[1]
    up = jnp.einsum("nchw,codk->nohdwk", from_up, wt).reshape(N, Cout, 2 * H, 2 * W)
    up = up + bt[None, :, None, None]
    x = jnp.concatenate([up, from_down], axis=1)
    dn = ("NCHW", "OIHW", "NCHW")
    x = jax.nn.relu(
        lax.conv_general_dilated(x, p["w1"], (1, 1), ((1, 1), (1, 1)),
                                 dimension_numbers=dn)
        + p["b1"][None, :, None, None])
    x = jax.nn.relu(
        lax.conv_general_dilated(x, p["w2"], (1, 1), ((1, 1), (1, 1)),
                                 dimension_numbers=dn)
        + p["b2"][None, :, None, None])
    return x


if __name__ == "__main__":
    key = jax.random.PRNGKey(0)
    in_channels, out_channels = 4, 4
    N, Hd, Wd = 2, 16, 16          # encoder (from_down) spatial size
    Hu, Wu = Hd // 2, Wd // 2      # decoder (from_up) spatial size

    ks = jax.random.split(key, 8)
    from_down = jax.random.normal(ks[0], (N, out_channels, Hd, Wd), jnp.float32)
    from_up = jax.random.normal(ks[1], (N, in_channels, Hu, Wu), jnp.float32)

    params = {
        "wt": 0.2 * jax.random.normal(ks[2], (in_channels, out_channels, 2, 2), jnp.float32),
        "bt": 0.1 * jax.random.normal(ks[3], (out_channels,), jnp.float32),
        "w1": 0.2 * jax.random.normal(ks[4], (out_channels, 2 * out_channels, 3, 3), jnp.float32),
        "b1": 0.1 * jax.random.normal(ks[5], (out_channels,), jnp.float32),
        "w2": 0.2 * jax.random.normal(ks[6], (out_channels, out_channels, 3, 3), jnp.float32),
        "b2": 0.1 * jax.random.normal(ks[7], (out_channels,), jnp.float32),
    }

    fwd = jax.jit(upconv_forward, static_argnames=("row_tile",))
    ref = ref_forward(from_down, from_up, params)

    # default (auto-picked) row tiles
    out = jax.block_until_ready(fwd(from_down, from_up, params))
    assert out.shape == ref.shape == (N, out_channels, Hd, Wd)
    np.testing.assert_allclose(np.asarray(out), np.asarray(ref), rtol=1e-4, atol=1e-4)

    # forced small tiles: exercises multi-block grids and the cross-block halo path
    out8 = jax.block_until_ready(fwd(from_down, from_up, params, row_tile=8))
    np.testing.assert_allclose(np.asarray(out8), np.asarray(ref), rtol=1e-4, atol=1e-4)

    print("KERNEL_OK")
</pallas_src>

<mosaic_0001>
module attributes {stable_mosaic.version = 11 : i64} {
  func.func @_upconcat_kernel(%arg0: i32, %arg1: memref<16x32xf32, #tpu.memory_space<vmem>>, %arg2: memref<16x128xf32, #tpu.memory_space<vmem>>, %arg3: memref<32x256xf32, #tpu.memory_space<vmem>>, %arg4: memref<128x256xf32, #tpu.memory_space<vmem>>, %arg5: memref<1x256xf32, #tpu.memory_space<vmem>>, %arg6: memref<16x256xf32, #tpu.memory_space<vmem>>) attributes {dimension_semantics = [#tpu.dimension_semantics<parallel>], iteration_bounds = array<i64: 1>, scalar_prefetch = 0 : i64, scratch_operands = 0 : i64, tpu.core_type = #tpu.core_type<tc>, window_params = [{transform_indices = @transform_0, window_bounds = array<i64: 16, 32>}, {transform_indices = @transform_1, window_bounds = array<i64: 16, 128>}, {pipeline_mode = #tpu.pipeline_mode<synchronous>, transform_indices = @transform_2, window_bounds = array<i64: 32, 256>}, {pipeline_mode = #tpu.pipeline_mode<synchronous>, transform_indices = @transform_3, window_bounds = array<i64: 128, 256>}, {pipeline_mode = #tpu.pipeline_mode<synchronous>, transform_indices = @transform_4, window_bounds = array<i64: 1, 256>}, {transform_indices = @transform_5, window_bounds = array<i64: 16, 256>}]} {
    %c0 = arith.constant 0 : index
    %c0_0 = arith.constant 0 : index
    %0 = vector.load %arg1[%c0, %c0_0] : memref<16x32xf32, #tpu.memory_space<vmem>>, vector<16x32xf32>
    %c0_1 = arith.constant 0 : index
    %c0_2 = arith.constant 0 : index
    %1 = vector.load %arg3[%c0_1, %c0_2] : memref<32x256xf32, #tpu.memory_space<vmem>>, vector<32x256xf32>
    %cst = arith.constant dense<0.000000e+00> : vector<16x256xf32>
    %2 = tpu.matmul %0, %1, %cst {dimension_numbers = #tpu.dot_dimension_numbers<[1], [0], [0], [1], [0, 0, 1, 1], [], []>} : vector<16x32xf32>, vector<32x256xf32>, vector<16x256xf32> -> vector<16x256xf32>
    %c0_3 = arith.constant 0 : index
    %c0_4 = arith.constant 0 : index
    %3 = vector.load %arg2[%c0_3, %c0_4] : memref<16x128xf32, #tpu.memory_space<vmem>>, vector<16x128xf32>
    %c0_5 = arith.constant 0 : index
    %c0_6 = arith.constant 0 : index
    %4 = vector.load %arg4[%c0_5, %c0_6] : memref<128x256xf32, #tpu.memory_space<vmem>>, vector<128x256xf32>
    %cst_7 = arith.constant dense<0.000000e+00> : vector<16x256xf32>
    %5 = tpu.matmul %3, %4, %cst_7 {dimension_numbers = #tpu.dot_dimension_numbers<[1], [0], [0], [1], [0, 0, 1, 1], [], []>} : vector<16x128xf32>, vector<128x256xf32>, vector<16x256xf32> -> vector<16x256xf32>
    %6 = arith.addf %2, %5 : vector<16x256xf32>
    %c0_8 = arith.constant 0 : index
    %c0_9 = arith.constant 0 : index
    %7 = vector.load %arg5[%c0_8, %c0_9] : memref<1x256xf32, #tpu.memory_space<vmem>>, vector<1x256xf32>
    %8 = vector.broadcast %7 : vector<1x256xf32> to vector<16x256xf32>
    %9 = arith.addf %6, %8 : vector<16x256xf32>
    %c0_10 = arith.constant 0 : index
    %c0_11 = arith.constant 0 : index
    %10 = vector.load %arg6[%c0_10, %c0_11] : memref<16x256xf32, #tpu.memory_space<vmem>>, vector<16x256xf32>
    tpu.vector_store %arg6[%c0_10, %c0_11], %9 {strides = array<i32>} : memref<16x256xf32, #tpu.memory_space<vmem>>, vector<16x256xf32>,
    return
  }
  func.func @transform_0(%arg0: i32) -> (i32, i32) {
    %c0_i32 = arith.constant 0 : i32
    %c0_i32_0 = arith.constant 0 : i32
    return %arg0, %c0_i32 : i32, i32
  }
  func.func @transform_1(%arg0: i32) -> (i32, i32) {
    %c0_i32 = arith.constant 0 : i32
    %c0_i32_0 = arith.constant 0 : i32
    return %arg0, %c0_i32 : i32, i32
  }
  func.func @transform_2(%arg0: i32) -> (i32, i32) {
    %c0_i32 = arith.constant 0 : i32
    %c0_i32_0 = arith.constant 0 : i32
    %c0_i32_1 = arith.constant 0 : i32
    return %c0_i32, %c0_i32_0 : i32, i32
  }
  func.func @transform_3(%arg0: i32) -> (i32, i32) {
    %c0_i32 = arith.constant 0 : i32
    %c0_i32_0 = arith.constant 0 : i32
    %c0_i32_1 = arith.constant 0 : i32
    return %c0_i32, %c0_i32_0 : i32, i32
  }
  func.func @transform_4(%arg0: i32) -> (i32, i32) {
    %c0_i32 = arith.constant 0 : i32
    %c0_i32_0 = arith.constant 0 : i32
    %c0_i32_1 = arith.constant 0 : i32
    return %c0_i32, %c0_i32_0 : i32, i32
  }
  func.func @transform_5(%arg0: i32) -> (i32, i32) {
    %c0_i32 = arith.constant 0 : i32
    %c0_i32_0 = arith.constant 0 : i32
    return %arg0, %c0_i32 : i32, i32
  }
}

module attributes {stable_mosaic.version = 11 : i64} {
  func.func @_conv3x3_rows_kernel(%arg0: i32, %arg1: memref<16x128xf32, #tpu.memory_space<vmem>>, %arg2: memref<8x128xf32, #tpu.memory_space<vmem>>, %arg3: memref<8x128xf32, #tpu.memory_space<vmem>>, %arg4: memref<3x128x64xf32, #tpu.memory_space<vmem>>, %arg5: memref<1x64xf32, #tpu.memory_space<vmem>>, %arg6: memref<16x64xf32, #tpu.memory_space<vmem>>) attributes {dimension_semantics = [#tpu.dimension_semantics<parallel>], iteration_bounds = array<i64: 2>, scalar_prefetch = 0 : i64, scratch_operands = 0 : i64, tpu.core_type = #tpu.core_type<tc>, window_params = [{transform_indices = @transform_0, window_bounds = array<i64: 16, 128>}, {transform_indices = @transform_1, window_bounds = array<i64: 8, 128>}, {transform_indices = @transform_2, window_bounds = array<i64: 8, 128>}, {pipeline_mode = #tpu.pipeline_mode<synchronous>, transform_indices = @transform_3, window_bounds = array<i64: 3, 128, 64>}, {pipeline_mode = #tpu.pipeline_mode<synchronous>, transform_indices = @transform_4, window_bounds = array<i64: 1, 64>}, {transform_indices = @transform_5, window_bounds = array<i64: 16, 64>}]} {
    %c1_i32 = arith.constant 1 : i32
    %c0_i32 = arith.constant 0 : i32
    %0 = arith.cmpi eq, %c1_i32, %c0_i32 : i32
    %c1_i32_0 = arith.constant 1 : i32
    %1 = arith.select %0, %c1_i32_0, %c1_i32 : i32
    %2 = arith.remsi %arg0, %1 : i32
    %c0_i32_1 = arith.constant 0 : i32
    %3 = arith.cmpi ne, %2, %c0_i32_1 : i32
    %c0_i32_2 = arith.constant 0 : i32
    %4 = arith.cmpi slt, %2, %c0_i32_2 : i32
    %c0_i32_3 = arith.constant 0 : i32
    %5 = arith.cmpi slt, %1, %c0_i32_3 : i32
    %6 = arith.xori %4, %5 : i1
    %7 = arith.andi %6, %3 : i1
    %8 = arith.addi %2, %1 : i32
    %9 = arith.select %7, %8, %2 : i32
    %c0_i32_4 = arith.constant 0 : i32
    %10 = arith.cmpi eq, %9, %c0_i32_4 : i32
    %cst = arith.constant 0.000000e+00 : f32
    %cst_5 = arith.constant 1.000000e+00 : f32
    %11 = arith.select %10, %cst, %cst_5 : f32
    %c0_i32_6 = arith.constant 0 : i32
    %12 = arith.cmpi eq, %9, %c0_i32_6 : i32
    %cst_7 = arith.constant 0.000000e+00 : f32
    %cst_8 = arith.constant 1.000000e+00 : f32
    %13 = arith.select %12, %cst_7, %cst_8 : f32
    %c0 = arith.constant 0 : index
    %c0_9 = arith.constant 0 : index
    %14 = vector.load %arg1[%c0, %c0_9] : memref<16x128xf32, #tpu.memory_space<vmem>>, vector<16x128xf32>
    %c7 = arith.constant 7 : index
    %c0_10 = arith.constant 0 : index
    %15 = vector.load %arg2[%c7, %c0_10] : memref<8x128xf32, #tpu.memory_space<vmem>>, vector<1x128xf32>
    %16 = vector.broadcast %11 : f32 to vector<1x128xf32>
    %17 = arith.mulf %15, %16 : vector<1x128xf32>
    %c0_11 = arith.constant 0 : index
    %c0_12 = arith.constant 0 : index
    %18 = vector.load %arg3[%c0_11, %c0_12] : memref<8x128xf32, #tpu.memory_space<vmem>>, vector<1x128xf32>
    %19 = vector.broadcast %13 : f32 to vector<1x128xf32>
    %20 = arith.mulf %18, %19 : vector<1x128xf32>
    %21 = vector.extract_strided_slice %14 {offsets = [0, 0], sizes = [15, 128], strides = [1, 1]} : vector<16x128xf32> to vector<15x128xf32>
    %22 = tpu.concatenate %17, %21 in 0 : vector<1x128xf32>, vector<15x128xf32> -> vector<16x128xf32>
    %23 = vector.extract_strided_slice %14 {offsets = [1, 0], sizes = [15, 128], strides = [1, 1]} : vector<16x128xf32> to vector<15x128xf32>
    %24 = tpu.concatenate %23, %20 in 0 : vector<15x128xf32>, vector<1x128xf32> -> vector<16x128xf32>
    %c0_13 = arith.constant 0 : index
    %c0_14 = arith.constant 0 : index
    %c0_15 = arith.constant 0 : index
    %25 = vector.load %arg4[%c0_13, %c0_14, %c0_15] : memref<3x128x64xf32, #tpu.memory_space<vmem>>, vector<1x128x64xf32>
    %26 = vector.shape_cast %25 : vector<1x128x64xf32> to vector<128x64xf32>
    %cst_16 = arith.constant dense<0.000000e+00> : vector<16x64xf32>
    %27 = tpu.matmul %22, %26, %cst_16 {dimension_numbers = #tpu.dot_dimension_numbers<[1], [0], [0], [1], [0, 0, 1, 1], [], []>} : vector<16x128xf32>, vector<128x64xf32>, vector<16x64xf32> -> vector<16x64xf32>
    %c1 = arith.constant 1 : index
    %c0_17 = arith.constant 0 : index
    %c0_18 = arith.constant 0 : index
    %28 = vector.load %arg4[%c1, %c0_17, %c0_18] : memref<3x128x64xf32, #tpu.memory_space<vmem>>, vector<1x128x64xf32>
    %29 = vector.shape_cast %28 : vector<1x128x64xf32> to vector<128x64xf32>
    %cst_19 = arith.constant dense<0.000000e+00> : vector<16x64xf32>
    %30 = tpu.matmul %14, %29, %cst_19 {dimension_numbers = #tpu.dot_dimension_numbers<[1], [0], [0], [1], [0, 0, 1, 1], [], []>} : vector<16x128xf32>, vector<128x64xf32>, vector<16x64xf32> -> vector<16x64xf32>
    %31 = arith.addf %27, %30 : vector<16x64xf32>
    %c2 = arith.constant 2 : index
    %c0_20 = arith.constant 0 : index
    %c0_21 = arith.constant 0 : index
    %32 = vector.load %arg4[%c2, %c0_20, %c0_21] : memref<3x128x64xf32, #tpu.memory_space<vmem>>, vector<1x128x64xf32>
    %33 = vector.shape_cast %32 : vector<1x128x64xf32> to vector<128x64xf32>
    %cst_22 = arith.constant dense<0.000000e+00> : vector<16x64xf32>
    %34 = tpu.matmul %24, %33, %cst_22 {dimension_numbers = #tpu.dot_dimension_numbers<[1], [0], [0], [1], [0, 0, 1, 1], [], []>} : vector<16x128xf32>, vector<128x64xf32>, vector<16x64xf32> -> vector<16x64xf32>
    %35 = arith.addf %31, %34 : vector<16x64xf32>
    %c0_23 = arith.constant 0 : index
    %c0_24 = arith.constant 0 : index
    %36 = vector.load %arg5[%c0_23, %c0_24] : memref<1x64xf32, #tpu.memory_space<vmem>>, vector<1x64xf32>
    %37 = vector.broadcast %36 : vector<1x64xf32> to vector<16x64xf32>
    %38 = arith.addf %35, %37 : vector<16x64xf32>
    %cst_25 = arith.constant 0.000000e+00 : f32
    %39 = vector.broadcast %cst_25 : f32 to vector<16x64xf32>
    %40 = arith.maximumf %38, %39 : vector<16x64xf32>
    %c0_26 = arith.constant 0 : index
    %c0_27 = arith.constant 0 : index
    %41 = vector.load %arg6[%c0_26, %c0_27] : memref<16x64xf32, #tpu.memory_space<vmem>>, vector<16x64xf32>
    tpu.vector_store %arg6[%c0_26, %c0_27], %40 {strides = array<i32>} : memref<16x64xf32, #tpu.memory_space<vmem>>, vector<16x64xf32>,
    return
  }
  func.func @transform_0(%arg0: i32) -> (i32, i32) {
    %c0_i32 = arith.constant 0 : i32
    %c0_i32_0 = arith.constant 0 : i32
    return %arg0, %c0_i32 : i32, i32
  }
  func.func @transform_1(%arg0: i32) -> (i32, i32) {
    %c2_i32 = arith.constant 2 : i32
    %0 = arith.muli %arg0, %c2_i32 : i32
    %c1_i32 = arith.constant 1 : i32
    %1 = arith.subi %0, %c1_i32 : i32
    %c0_i32 = arith.constant 0 : i32
    %2 = arith.maxsi %1, %c0_i32 : i32
    %c0_i32_0 = arith.constant 0 : i32
    %c0_i32_1 = arith.constant 0 : i32
    return %2, %c0_i32_0 : i32, i32
  }
  func.func @transform_2(%arg0: i32) -> (i32, i32) {
    %c2_i32 = arith.constant 2 : i32
    %0 = arith.muli %arg0, %c2_i32 : i32
    %c2_i32_0 = arith.constant 2 : i32
    %1 = arith.addi %0, %c2_i32_0 : i32
    %c3_i32 = arith.constant 3 : i32
    %2 = arith.minsi %1, %c3_i32 : i32
    %c0_i32 = arith.constant 0 : i32
    %c0_i32_1 = arith.constant 0 : i32
    return %2, %c0_i32 : i32, i32
  }
  func.func @transform_3(%arg0: i32) -> (i32, i32, i32) {
    %c0_i32 = arith.constant 0 : i32
    %c0_i32_0 = arith.constant 0 : i32
    %c0_i32_1 = arith.constant 0 : i32
    %c0_i32_2 = arith.constant 0 : i32
    return %c0_i32, %c0_i32_0, %c0_i32_1 : i32, i32, i32
  }
  func.func @transform_4(%arg0: i32) -> (i32, i32) {
    %c0_i32 = arith.constant 0 : i32
    %c0_i32_0 = arith.constant 0 : i32
    %c0_i32_1 = arith.constant 0 : i32
    return %c0_i32, %c0_i32_0 : i32, i32
  }
  func.func @transform_5(%arg0: i32) -> (i32, i32) {
    %c0_i32 = arith.constant 0 : i32
    %c0_i32_0 = arith.constant 0 : i32
    return %arg0, %c0_i32 : i32, i32
  }
}

module attributes {stable_mosaic.version = 11 : i64} {
  func.func @_conv3x3_rows_kernel(%arg0: i32, %arg1: memref<16x64xf32, #tpu.memory_space<vmem>>, %arg2: memref<8x64xf32, #tpu.memory_space<vmem>>, %arg3: memref<8x64xf32, #tpu.memory_space<vmem>>, %arg4: memref<3x64x64xf32, #tpu.memory_space<vmem>>, %arg5: memref<1x64xf32, #tpu.memory_space<vmem>>, %arg6: memref<16x64xf32, #tpu.memory_space<vmem>>) attributes {dimension_semantics = [#tpu.dimension_semantics<parallel>], iteration_bounds = array<i64: 2>, scalar_prefetch = 0 : i64, scratch_operands = 0 : i64, tpu.core_type = #tpu.core_type<tc>, window_params = [{transform_indices = @transform_0, window_bounds = array<i64: 16, 64>}, {transform_indices = @transform_1, window_bounds = array<i64: 8, 64>}, {transform_indices = @transform_2, window_bounds = array<i64: 8, 64>}, {pipeline_mode = #tpu.pipeline_mode<synchronous>, transform_indices = @transform_3, window_bounds = array<i64: 3, 64, 64>}, {pipeline_mode = #tpu.pipeline_mode<synchronous>, transform_indices = @transform_4, window_bounds = array<i64: 1, 64>}, {transform_indices = @transform_5, window_bounds = array<i64: 16, 64>}]} {
    %c1_i32 = arith.constant 1 : i32
    %c0_i32 = arith.constant 0 : i32
    %0 = arith.cmpi eq, %c1_i32, %c0_i32 : i32
    %c1_i32_0 = arith.constant 1 : i32
    %1 = arith.select %0, %c1_i32_0, %c1_i32 : i32
    %2 = arith.remsi %arg0, %1 : i32
    %c0_i32_1 = arith.constant 0 : i32
    %3 = arith.cmpi ne, %2, %c0_i32_1 : i32
    %c0_i32_2 = arith.constant 0 : i32
    %4 = arith.cmpi slt, %2, %c0_i32_2 : i32
    %c0_i32_3 = arith.constant 0 : i32
    %5 = arith.cmpi slt, %1, %c0_i32_3 : i32
    %6 = arith.xori %4, %5 : i1
    %7 = arith.andi %6, %3 : i1
    %8 = arith.addi %2, %1 : i32
    %9 = arith.select %7, %8, %2 : i32
    %c0_i32_4 = arith.constant 0 : i32
    %10 = arith.cmpi eq, %9, %c0_i32_4 : i32
    %cst = arith.constant 0.000000e+00 : f32
    %cst_5 = arith.constant 1.000000e+00 : f32
    %11 = arith.select %10, %cst, %cst_5 : f32
    %c0_i32_6 = arith.constant 0 : i32
    %12 = arith.cmpi eq, %9, %c0_i32_6 : i32
    %cst_7 = arith.constant 0.000000e+00 : f32
    %cst_8 = arith.constant 1.000000e+00 : f32
    %13 = arith.select %12, %cst_7, %cst_8 : f32
    %c0 = arith.constant 0 : index
    %c0_9 = arith.constant 0 : index
    %14 = vector.load %arg1[%c0, %c0_9] : memref<16x64xf32, #tpu.memory_space<vmem>>, vector<16x64xf32>
    %c7 = arith.constant 7 : index
    %c0_10 = arith.constant 0 : index
    %15 = vector.load %arg2[%c7, %c0_10] : memref<8x64xf32, #tpu.memory_space<vmem>>, vector<1x64xf32>
    %16 = vector.broadcast %11 : f32 to vector<1x64xf32>
    %17 = arith.mulf %15, %16 : vector<1x64xf32>
    %c0_11 = arith.constant 0 : index
    %c0_12 = arith.constant 0 : index
    %18 = vector.load %arg3[%c0_11, %c0_12] : memref<8x64xf32, #tpu.memory_space<vmem>>, vector<1x64xf32>
    %19 = vector.broadcast %13 : f32 to vector<1x64xf32>
    %20 = arith.mulf %18, %19 : vector<1x64xf32>
    %21 = vector.extract_strided_slice %14 {offsets = [0, 0], sizes = [15, 64], strides = [1, 1]} : vector<16x64xf32> to vector<15x64xf32>
    %22 = tpu.concatenate %17, %21 in 0 : vector<1x64xf32>, vector<15x64xf32> -> vector<16x64xf32>
    %23 = vector.extract_strided_slice %14 {offsets = [1, 0], sizes = [15, 64], strides = [1, 1]} : vector<16x64xf32> to vector<15x64xf32>
    %24 = tpu.concatenate %23, %20 in 0 : vector<15x64xf32>, vector<1x64xf32> -> vector<16x64xf32>
    %c0_13 = arith.constant 0 : index
    %c0_14 = arith.constant 0 : index
    %c0_15 = arith.constant 0 : index
    %25 = vector.load %arg4[%c0_13, %c0_14, %c0_15] : memref<3x64x64xf32, #tpu.memory_space<vmem>>, vector<1x64x64xf32>
    %26 = vector.shape_cast %25 : vector<1x64x64xf32> to vector<64x64xf32>
    %cst_16 = arith.constant dense<0.000000e+00> : vector<16x64xf32>
    %27 = tpu.matmul %22, %26, %cst_16 {dimension_numbers = #tpu.dot_dimension_numbers<[1], [0], [0], [1], [0, 0, 1, 1], [], []>} : vector<16x64xf32>, vector<64x64xf32>, vector<16x64xf32> -> vector<16x64xf32>
    %c1 = arith.constant 1 : index
    %c0_17 = arith.constant 0 : index
    %c0_18 = arith.constant 0 : index
    %28 = vector.load %arg4[%c1, %c0_17, %c0_18] : memref<3x64x64xf32, #tpu.memory_space<vmem>>, vector<1x64x64xf32>
    %29 = vector.shape_cast %28 : vector<1x64x64xf32> to vector<64x64xf32>
    %cst_19 = arith.constant dense<0.000000e+00> : vector<16x64xf32>
    %30 = tpu.matmul %14, %29, %cst_19 {dimension_numbers = #tpu.dot_dimension_numbers<[1], [0], [0], [1], [0, 0, 1, 1], [], []>} : vector<16x64xf32>, vector<64x64xf32>, vector<16x64xf32> -> vector<16x64xf32>
    %31 = arith.addf %27, %30 : vector<16x64xf32>
    %c2 = arith.constant 2 : index
    %c0_20 = arith.constant 0 : index
    %c0_21 = arith.constant 0 : index
    %32 = vector.load %arg4[%c2, %c0_20, %c0_21] : memref<3x64x64xf32, #tpu.memory_space<vmem>>, vector<1x64x64xf32>
    %33 = vector.shape_cast %32 : vector<1x64x64xf32> to vector<64x64xf32>
    %cst_22 = arith.constant dense<0.000000e+00> : vector<16x64xf32>
    %34 = tpu.matmul %24, %33, %cst_22 {dimension_numbers = #tpu.dot_dimension_numbers<[1], [0], [0], [1], [0, 0, 1, 1], [], []>} : vector<16x64xf32>, vector<64x64xf32>, vector<16x64xf32> -> vector<16x64xf32>
    %35 = arith.addf %31, %34 : vector<16x64xf32>
    %c0_23 = arith.constant 0 : index
    %c0_24 = arith.constant 0 : index
    %36 = vector.load %arg5[%c0_23, %c0_24] : memref<1x64xf32, #tpu.memory_space<vmem>>, vector<1x64xf32>
    %37 = vector.broadcast %36 : vector<1x64xf32> to vector<16x64xf32>
    %38 = arith.addf %35, %37 : vector<16x64xf32>
    %cst_25 = arith.constant 0.000000e+00 : f32
    %39 = vector.broadcast %cst_25 : f32 to vector<16x64xf32>
    %40 = arith.maximumf %38, %39 : vector<16x64xf32>
    %c0_26 = arith.constant 0 : index
    %c0_27 = arith.constant 0 : index
    %41 = vector.load %arg6[%c0_26, %c0_27] : memref<16x64xf32, #tpu.memory_space<vmem>>, vector<16x64xf32>
    tpu.vector_store %arg6[%c0_26, %c0_27], %40 {strides = array<i32>} : memref<16x64xf32, #tpu.memory_space<vmem>>, vector<16x64xf32>,
    return
  }
  func.func @transform_0(%arg0: i32) -> (i32, i32) {
    %c0_i32 = arith.constant 0 : i32
    %c0_i32_0 = arith.constant 0 : i32
    return %arg0, %c0_i32 : i32, i32
  }
  func.func @transform_1(%arg0: i32) -> (i32, i32) {
    %c2_i32 = arith.constant 2 : i32
    %0 = arith.muli %arg0, %c2_i32 : i32
    %c1_i32 = arith.constant 1 : i32
    %1 = arith.subi %0, %c1_i32 : i32
    %c0_i32 = arith.constant 0 : i32
    %2 = arith.maxsi %1, %c0_i32 : i32
    %c0_i32_0 = arith.constant 0 : i32
    %c0_i32_1 = arith.constant 0 : i32
    return %2, %c0_i32_0 : i32, i32
  }
  func.func @transform_2(%arg0: i32) -> (i32, i32) {
    %c2_i32 = arith.constant 2 : i32
    %0 = arith.muli %arg0, %c2_i32 : i32
    %c2_i32_0 = arith.constant 2 : i32
    %1 = arith.addi %0, %c2_i32_0 : i32
    %c3_i32 = arith.constant 3 : i32
    %2 = arith.minsi %1, %c3_i32 : i32
    %c0_i32 = arith.constant 0 : i32
    %c0_i32_1 = arith.constant 0 : i32
    return %2, %c0_i32 : i32, i32
  }
  func.func @transform_3(%arg0: i32) -> (i32, i32, i32) {
    %c0_i32 = arith.constant 0 : i32
    %c0_i32_0 = arith.constant 0 : i32
    %c0_i32_1 = arith.constant 0 : i32
    %c0_i32_2 = arith.constant 0 : i32
    return %c0_i32, %c0_i32_0, %c0_i32_1 : i32, i32, i32
  }
  func.func @transform_4(%arg0: i32) -> (i32, i32) {
    %c0_i32 = arith.constant 0 : i32
    %c0_i32_0 = arith.constant 0 : i32
    %c0_i32_1 = arith.constant 0 : i32
    return %c0_i32, %c0_i32_0 : i32, i32
  }
  func.func @transform_5(%arg0: i32) -> (i32, i32) {
    %c0_i32 = arith.constant 0 : i32
    %c0_i32_0 = arith.constant 0 : i32
    return %arg0, %c0_i32 : i32, i32
  }
}

</mosaic_0001>

<bundles_post_ra>
// kernel: tile.18
= control target key start
LH: loop header
LB: loop body
LE: loop exit
PB: predicated region body
PF: predicated region fallthrough
CT: control target
= control target key end

     0   :  { %s40_s0 = inlined_call_operand.vmem [shape: f32[8], index: 0, kind: input, shape index: {}]   ;;  %s41_s1 = inlined_call_operand.vmem [shape: f32[32,8], index: 1, kind: output, shape index: {}]  }
   0x1   :  { %v4_v0 = vld [vmem:[%s40_s0] ss:$0 sm:$0xff] }
   0x2   :  { %5 = vst [vmem:[%s41_s1] sm:$0xff] %v4_v0  ;;  %12 = vst [vmem:[%s41_s1 + $0x8] sm:$0xff] %v4_v0 }
   0x3   :  { %13 = vst [vmem:[%s41_s1 + $0x10] sm:$0xff] %v4_v0  ;;  %14 = vst [vmem:[%s41_s1 + $0x18] sm:$0xff] %v4_v0 }

// kernel: tile.19
= control target key start
LH: loop header
LB: loop body
LE: loop exit
PB: predicated region body
PF: predicated region fallthrough
CT: control target
= control target key end

     0   :  { %s7_s6 = smov 3  ;;  %s21_s9 = smov 3  ;;  %vm4_vm0 = vcmask 64512   ;;  %vm11_vm1 = vcmask 1048512   ;;  %vm18_vm2 = vcmask 982912   ;;  %vm25_vm3 = vcmask 917312   ;;  %s232_s0 = inlined_call_operand.vmem [shape: f32[32,8], index: 0, kind: input, shape index: {}]   ;;  %s233_s1 = inlined_call_operand.vmem [shape: f32[1,256], index: 1, kind: output, shape index: {}]  }
   0x1   :  { %v122_v0 = vld [vmem:[%s232_s0 + $0xf] ss:$16 sm:%s7_s6]   ;;  %s153_s10 = smov 120   ;;  %v124_v1 = vld [vmem:[%s232_s0 + $0xd] ss:$16 sm:%s21_s9]   ;;  %s14_s13 = smov 3 }
   0x2   :  { %9 = vrot.lane.b32.xlu0 %v122_v0, %s153_s10  ;;  %s154_s14 = smov 104   ;;  %v123_v2 = vld [vmem:[%s232_s0 + $0xe] ss:$16 sm:%s14_s13]   ;;  %s28_s17 = smov 3  ;;  %vm32_vm4 = vcmask 851712   ;;  %vm39_vm5 = vcmask 786112  }
   0x3   :  { %23 = vrot.lane.b32.xlu1 %v124_v1, %s154_s14  ;;  %v125_v3 = vld [vmem:[%s232_s0 + $0xc] ss:$16 sm:%s28_s17]   ;;  %s35_s20 = smov 3  ;;  %s42_s21 = smov 3  ;;  %vm46_vm6 = vcmask 720512   ;;  %vm53_vm7 = vcmask 654912  }
   0x4   :  { %s155_s22 = smov 112   ;;  %s156_s23 = smov 96   ;;  %v126_v4 = vld [vmem:[%s232_s0 + $0xb] ss:$16 sm:%s35_s20]   ;;  %v127_v5 = vld [vmem:[%s232_s0 + $0xa] ss:$16 sm:%s42_s21]  }
   0x5   :  { %s49_s28 = smov 3  ;;  %s56_s29 = smov 3  ;;  %vm60_vm8 = vcmask 589312   ;;  %vm67_vm9 = vcmask 523712   ;;  %vm74_vm10 = vcmask 458112   ;;  %vm81_vm11 = vcmask 392512  }
   0x6   :  { %16 = vrot.lane.b32.xlu0 %v123_v2, %s155_s22  ;;  %s157_s30 = smov 88   ;;  %s158_s2 = smov 80   ;;  %v128_v6 = vld [vmem:[%s232_s0 + $0x9] ss:$16 sm:%s49_s28]   ;;  %vm88_vm12 = vcmask 326912   ;;  %vm95_vm13 = vcmask 261312  }
   0x7   :  { %30 = vrot.lane.b32.xlu1 %v125_v3, %s156_s23  ;;  %v129_v7 = vld [vmem:[%s232_s0 + $0x8] ss:$16 sm:%s56_s29]   ;;  %s63_s7 = smov 3  ;;  %s70_s8 = smov 3  ;;  %vm102_vm14 = vcmask 195712   ;;  %vm109_vm15 = vcmask 130112  }
   0x8   :  { %s159_s9 = smov 72   ;;  %s160_s10 = smov 64   ;;  %v130_v8 = vld [vmem:[%s232_s0 + $0x7] ss:$16 sm:%s63_s7]   ;;  %v131_v9 = vld [vmem:[%s232_s0 + $0x6] ss:$16 sm:%s70_s8]  }
   0x9   :  { %s2_s13 = smov 3  ;;  %s77_s16 = smov 3 }
   0xa   :  { %37 = vrot.lane.b32.xlu0 %v126_v4, %s157_s30  ;;  %v3_v10 = vld [vmem:[%s232_s0] ss:$16 sm:%s2_s13]   ;;  %s84_s19 = smov 3  ;;  %s161_s20 = smov 56  }
   0xb   :  { %44 = vrot.lane.b32.xlu1 %v127_v5, %s158_s2  ;;  %5 = vst.msk [vmem:[#allocation0] ss:$8 sm:$0x3] %vm4_vm0, %v3_v10   ;;  %s162_s21 = smov 48   ;;  %v132_v11 = vld [vmem:[%s232_s0 + $0x5] ss:$16 sm:%s77_s16]  }
   0xc   :  { %v133_v12 = vld [vmem:[%s232_s0 + $0x4] ss:$16 sm:%s84_s19]   ;;  %s91_s26 = smov 3  ;;  %s98_s27 = smov 3 }
   0xd   :  { %s163_s28 = smov 40   ;;  %s164_s29 = smov 32   ;;  %v134_v13 = vld [vmem:[%s232_s0 + $0x3] ss:$16 sm:%s91_s26]   ;;  %v135_v14 = vld [vmem:[%s232_s0 + $0x2] ss:$16 sm:%s98_s27]  }
   0xe   :  { %51 = vrot.lane.b32.xlu0 %v128_v6, %s159_s9  ;;  %s105_s5 = smov 3  ;;  %s165_s6 = smov 24  }
   0xf   :  { %58 = vrot.lane.b32.xlu1 %v129_v7, %s160_s10  ;;  %s166_s7 = smov 16   ;;  %v136_v15 = vld [vmem:[%s232_s0 + $0x1] ss:$16 sm:%s105_s5]   ;;  %s167_s0 = smov 8  }
  0x12   :  { %65 = vrot.lane.b32.xlu0 %v130_v8, %s161_s20 }
  0x13   :  { %72 = vrot.lane.b32.xlu1 %v131_v9, %s162_s21 }
  0x16   :  { %79 = vrot.lane.b32.xlu0 %v132_v11, %s163_s28 }
  0x17   :  { %86 = vrot.lane.b32.xlu1 %v133_v12, %s164_s29 }
  0x1a   :  { %93 = vrot.lane.b32.xlu0 %v134_v13, %s165_s6 }
  0x1b   :  { %100 = vrot.lane.b32.xlu1 %v135_v14, %s166_s7 }
  0x1e   :  { %107 = vrot.lane.b32.xlu0 %v136_v15, %s167_s0 }
  0x74   :  { %v10_v16 = vpop.permute.xlu0 %9  }
  0x75   :  { %12 = vst.msk [vmem:[#allocation0] ss:$8 sm:$0x3] %vm11_vm1, %v10_v16   ;;  %v24_v17 = vpop.permute.xlu1 %23  }
  0x78   :  { %v17_v18 = vpop.permute.xlu0 %16  }
  0x79   :  { %19 = vst.msk [vmem:[#allocation0] ss:$8 sm:$0x3] %vm18_vm2, %v17_v18   ;;  %v31_v19 = vpop.permute.xlu1 %30  }
  0x7a   :  { %26 = vst.msk [vmem:[#allocation0] ss:$8 sm:$0x3] %vm25_vm3, %v24_v17  }
  0x7b   :  { %33 = vst.msk [vmem:[#allocation0] ss:$8 sm:$0x3] %vm32_vm4, %v31_v19  }
  0x7c   :  { %v38_v20 = vpop.permute.xlu0 %37  }
  0x7d   :  { %40 = vst.msk [vmem:[#allocation0] ss:$8 sm:$0x3] %vm39_vm5, %v38_v20   ;;  %v45_v21 = vpop.permute.xlu1 %44  }
  0x7e   :  { %47 = vst.msk [vmem:[#allocation0] ss:$8 sm:$0x3] %vm46_vm6, %v45_v21  }
  0x80   :  { %v52_v22 = vpop.permute.xlu0 %51  }
  0x81   :  { %54 = vst.msk [vmem:[#allocation0] ss:$8 sm:$0x3] %vm53_vm7, %v52_v22   ;;  %v59_v23 = vpop.permute.xlu1 %58  }
  0x82   :  { %61 = vst.msk [vmem:[#allocation0] ss:$8 sm:$0x3] %vm60_vm8, %v59_v23  }
  0x84   :  { %v66_v24 = vpop.permute.xlu0 %65  }
  0x85   :  { %68 = vst.msk [vmem:[#allocation0] ss:$8 sm:$0x3] %vm67_vm9, %v66_v24   ;;  %v73_v25 = vpop.permute.xlu1 %72  }
  0x86   :  { %75 = vst.msk [vmem:[#allocation0] ss:$8 sm:$0x3] %vm74_vm10, %v73_v25  }
  0x88   :  { %v80_v26 = vpop.permute.xlu0 %79  }
  0x89   :  { %82 = vst.msk [vmem:[#allocation0] ss:$8 sm:$0x3] %vm81_vm11, %v80_v26   ;;  %v87_v27 = vpop.permute.xlu1 %86  }
  0x8a   :  { %89 = vst.msk [vmem:[#allocation0] ss:$8 sm:$0x3] %vm88_vm12, %v87_v27  }
  0x8c   :  { %v94_v28 = vpop.permute.xlu0 %93  }
  0x8d   :  { %96 = vst.msk [vmem:[#allocation0] ss:$8 sm:$0x3] %vm95_vm13, %v94_v28   ;;  %v101_v29 = vpop.permute.xlu1 %100  }
  0x8e   :  { %103 = vst.msk [vmem:[#allocation0] ss:$8 sm:$0x3] %vm102_vm14, %v101_v29  }
  0x90   :  { %v108_v30 = vpop.permute.xlu0 %107  }
  0x91   :  { %110 = vst.msk [vmem:[#allocation0] ss:$8 sm:$0x3] %vm109_vm15, %v108_v30  }
  0x98   :  { %v114_v31 = vld [vmem:[#allocation0] sm:$0x1]  ;;  %v118_v32 = vld [vmem:[#allocation0 + $0x8] sm:$0x1] }
  0x99   :  { %116 = vst [vmem:[%s233_s1] sm:$0x1] %v114_v31  ;;  %137 = vst [vmem:[%s233_s1 + $0x1] sm:$0x1] %v118_v32 }

// kernel: upconv_forward.3
= control target key start
LH: loop header
LB: loop body
LE: loop exit
PB: predicated region body
PF: predicated region fallthrough
CT: control target
= control target key end

     0   :  { %v296_v3 = vmov 0.0   ;;  %vm141_vm0 = vcmask 261120   ;;  %s480_s3 = inlined_call_operand.vmem [shape: f32[128,256], index: 3, kind: input, shape index: {}]   ;;  %s481_s2 = inlined_call_operand.vmem [shape: f32[32,256], index: 2, kind: input, shape index: {}]   ;;  %s482_s0 = inlined_call_operand.vmem [shape: f32[16,32], index: 0, kind: input, shape index: {}]   ;;  %s483_s1 = inlined_call_operand.vmem [shape: f32[16,128], index: 1, kind: input, shape index: {}]   ;;  %s484_s4 = inlined_call_operand.vmem [shape: f32[1,256], index: 4, kind: input, shape index: {}]   ;;  %s485_s5 = inlined_call_operand.vmem [shape: f32[16,256], index: 5, kind: output, shape index: {}]  }
   0x1   :  { %v33_v0 = vld [vmem:[%s480_s3 + $0x8] sm:$0xff]  ;;  %v35_v1 = vld [vmem:[%s480_s3 + $0x18] sm:$0xff]  ;;  %v32_v2 = vld [vmem:[%s480_s3] sm:$0xff]  ;;  %212 = vmatprep.mubr.f32.mxu0 %v296_v3  ;;  %128 = vmatprep.mubr.f32.mxu1 %v296_v3 }
   0x2   :  { %v251_v4 = vpack.c.bf16 %v35_v1, %v33_v0  ;;  %v34_v5 = vld [vmem:[%s480_s3 + $0x10] sm:$0xff]  ;;  %v37_v6 = vld [vmem:[%s480_s3 + $0x28] sm:$0xff]  ;;  %v39_v7 = vld [vmem:[%s480_s3 + $0x38] sm:$0xff] }
   0x3   :  { %v253_v8 = vpack.c.bf16 %v34_v5, %v32_v2  ;;  %v255_v9 = vpack.c.bf16 %v39_v7, %v37_v6  ;;  %v36_v10 = vld [vmem:[%s480_s3 + $0x20] sm:$0xff]  ;;  %v38_v11 = vld [vmem:[%s480_s3 + $0x30] sm:$0xff]  ;;  %v41_v12 = vld [vmem:[%s480_s3 + $0x48] sm:$0xff] }
   0x4   :  { %252 = vmatprep.subr.bf16.mxu1 %v251_v4  ;;  %v43_v13 = vld [vmem:[%s480_s3 + $0x58] sm:$0xff]  ;;  %v257_v14 = vpack.c.bf16 %v38_v11, %v36_v10  ;;  %v40_v16 = vld [vmem:[%s480_s3 + $0x40] sm:$0xff]  ;;  %v42_v17 = vld [vmem:[%s480_s3 + $0x50] sm:$0xff]  ;;  %v227_v4 = vlaneseq }
   0x5   :  { %254 = vmatpush1.bf16.msra.mxu1 %v253_v8  ;;  %v259_v15 = vpack.c.bf16 %v43_v13, %v41_v12  ;;  %v45_v18 = vld [vmem:[%s480_s3 + $0x68] sm:$0xff]  ;;  %v47_v19 = vld [vmem:[%s480_s3 + $0x78] sm:$0xff]  ;;  %v261_v20 = vpack.c.bf16 %v42_v17, %v40_v16  ;;  %v44_v21 = vld [vmem:[%s480_s3 + $0x60] sm:$0xff] }
   0x6   :  { %256 = vmatprep.subr.bf16.mxu1 %v255_v9  ;;  %v23_v22 = vld [vmem:[%s481_s2 + $0x8] sm:$0xff]  ;;  %v25_v23 = vld [vmem:[%s481_s2 + $0x18] sm:$0xff]  ;;  %v263_v24 = vpack.c.bf16 %v47_v19, %v45_v18  ;;  %v46_v25 = vld [vmem:[%s480_s3 + $0x70] sm:$0xff]  ;;  %v228_v7 = vshrl.u32 %v227_v4, 7 }
   0x7   :  { %v283_v26 = vpack.c.bf16 %v25_v23, %v23_v22  ;;  %v22_v27 = vld [vmem:[%s481_s2] sm:$0xff]  ;;  %v24_v28 = vld [vmem:[%s481_s2 + $0x10] sm:$0xff]  ;;  %v49_v29 = vld [vmem:[%s480_s3 + $0x88] sm:$0xff]  ;;  %v265_v34 = vpack.c.bf16 %v46_v25, %v44_v21 }
   0x8   :  { %v51_v30 = vld [vmem:[%s480_s3 + $0x98] sm:$0xff]  ;;  %v285_v31 = vpack.c.bf16 %v24_v28, %v22_v27  ;;  %v27_v32 = vld [vmem:[%s481_s2 + $0x28] sm:$0xff]  ;;  %v26_v36 = vld [vmem:[%s481_s2 + $0x20] sm:$0xff]  ;;  %v229_v8 = vsub.s32 0, %v228_v7  ;;  %v233_v10 = vsub.s32 1, %v228_v7 }
   0x9   :  { %258 = vmatpush1.bf16.msra.mxu1 %v257_v14  ;;  %284 = vmatprep.subr.bf16.mxu0 %v283_v26  ;;  %v29_v33 = vld [vmem:[%s481_s2 + $0x38] sm:$0xff]  ;;  %v28_v37 = vld [vmem:[%s481_s2 + $0x30] sm:$0xff]  ;;  %v267_v38 = vpack.c.bf16 %v51_v30, %v49_v29  ;;  %v48_v39 = vld [vmem:[%s480_s3 + $0x80] sm:$0xff] }
   0xa   :  { %260 = vmatprep.subr.bf16.mxu1 %v259_v15  ;;  %286 = vmatpush1.bf16.msra.mxu0 %v285_v31  ;;  %v287_v35 = vpack.c.bf16 %v29_v33, %v27_v32  ;;  %v50_v40 = vld [vmem:[%s480_s3 + $0x90] sm:$0xff]  ;;  %v289_v41 = vpack.c.bf16 %v28_v37, %v26_v36  ;;  %v53_v42 = vld [vmem:[%s480_s3 + $0xa8] sm:$0xff]  ;;  %v55_v43 = vld [vmem:[%s480_s3 + $0xb8] sm:$0xff] }
   0xb   :  { %v269_v44 = vpack.c.bf16 %v50_v40, %v48_v39  ;;  %v20_v45 = vld [vmem:[%s482_s0] sm:$0xff]  ;;  %v271_v46 = vpack.c.bf16 %v55_v43, %v53_v42  ;;  %v54_v48 = vld [vmem:[%s480_s3 + $0xb0] sm:$0xff]  ;;  %v57_v49 = vld [vmem:[%s480_s3 + $0xc8] sm:$0xff] }
   0xc   :  { %288 = vmatprep.subr.bf16.mxu0 %v287_v35  ;;  %v52_v47 = vld [vmem:[%s480_s3 + $0xa0] sm:$0xff]  ;;  %v59_v50 = vld [vmem:[%s480_s3 + $0xd8] sm:$0xff]  ;;  %v21_v52 = vld [vmem:[%s482_s0 + $0x8] sm:$0xff] }
   0xd   :  { %262 = vmatpush1.bf16.msra.mxu1 %v261_v20  ;;  %v273_v51 = vpack.c.bf16 %v54_v48, %v52_v47  ;;  %v275_v53 = vpack.c.bf16 %v59_v50, %v57_v49  ;;  %v56_v54 = vld [vmem:[%s480_s3 + $0xc0] sm:$0xff]  ;;  %v58_v55 = vld [vmem:[%s480_s3 + $0xd0] sm:$0xff]  ;;  %v61_v56 = vld [vmem:[%s480_s3 + $0xe8] sm:$0xff] }
   0xe   :  { %264 = vmatprep.subr.bf16.mxu1 %v263_v24  ;;  %290 = vmatpush1.bf16.msra.mxu0 %v289_v41  ;;  %v63_v57 = vld [vmem:[%s480_s3 + $0xf8] sm:$0xff]  ;;  %v277_v58 = vpack.c.bf16 %v58_v55, %v56_v54  ;;  %v60_v60 = vld [vmem:[%s480_s3 + $0xe0] sm:$0xff]  ;;  %v62_v61 = vld [vmem:[%s480_s3 + $0xf0] sm:$0xff] }
   0xf   :  { %v279_v59 = vpack.c.bf16 %v63_v57, %v61_v56  ;;  %v281_v62 = vpack.c.bf16 %v62_v61, %v60_v60  ;;  %v30_v63 = vld [vmem:[%s483_s1] sm:$0xff]  ;;  %v31_v0 = vld [vmem:[%s483_s1 + $0x8] sm:$0xff] }
  0x10   :  { %v225_v9 = vld [vmem:[%s484_s4] sm:$0x3] }
  0x11   :  { %266 = vmatpush1.bf16.msra.mxu1 %v265_v34  ;;  %249 = vmatmul.mubr.msk.f32.vlgmr.msra.gmra.mrb[0].mxu0 %vm141_vm0, %v20_v45  ;;  %v230_v11 = vrot.slane %v225_v9, %v229_v8 }
  0x12   :  { %268 = vmatprep.subr.bf16.mxu1 %v267_v38  ;;  %218 = vmatprep.mubr.f32.mxu0 %v296_v3 }
  0x15   :  { %270 = vmatpush1.bf16.msra.mxu1 %v269_v44  ;;  %250 = vmatmul.mubr.msk.f32.gmra.mrb[2].mxu0 %vm141_vm0, %v21_v52 }
  0x16   :  { %272 = vmatprep.subr.bf16.mxu1 %v271_v46 }
  0x19   :  { %274 = vmatpush1.bf16.msra.mxu1 %v273_v51 }
  0x1a   :  { %276 = vmatprep.subr.bf16.mxu1 %v275_v53 }
  0x1d   :  { %278 = vmatpush1.bf16.msra.mxu1 %v277_v58 }
  0x1e   :  { %280 = vmatprep.subr.bf16.mxu1 %v279_v59 }
  0x21   :  { %282 = vmatpush1.bf16.msra.mxu1 %v281_v62 }
  0x24   :  { %129 = vmatmul.mubr.f32.vlgmr.msra.gmra.mrb[0].mxu1 %v30_v63 }
  0x25   :  { %134 = vmatprep.mubr.f32.mxu1 %v296_v3  ;;  %v234_v3 = vrot.slane %v225_v9, %v233_v10 }
  0x28   :  { %135 = vmatmul.mubr.f32.gmra.mrb[2].mxu1 %v31_v0 }
  0xe4   :  { %v214_v1 = vpop.f32.mrb[0].mxu0 }
  0xe5   :  { %v216_v2 = vpop.f32.mrb[1].mxu0 }
  0xe8   :  { %v220_v5 = vpop.f32.mrb[2].mxu0 }
  0xe9   :  { %v222_v6 = vpop.f32.mrb[3].mxu0 }
  0xf7   :  { %v130_v12 = vpop.f32.mrb[0].mxu1 }
  0xf8   :  { %v215_v13 = vadd.f32 %v214_v1, %v130_v12  ;;  %v132_v14 = vpop.f32.mrb[1].mxu1 }
  0xf9   :  { %v217_v15 = vadd.f32 %v216_v2, %v132_v14 }
  0xfa   :  { %v237_v16 = vadd.f32 %v230_v11, %v215_v13 }
  0xfb   :  { %v238_v17 = vadd.f32 %v234_v3, %v217_v15  ;;  %v136_v18 = vpop.f32.mrb[2].mxu1 }
  0xfc   :  { %241 = vst [vmem:[%s485_s5] sm:$0xff] %v237_v16  ;;  %v221_v19 = vadd.f32 %v220_v5, %v136_v18  ;;  %v138_v20 = vpop.f32.mrb[3].mxu1 }
  0xfd   :  { %242 = vst [vmem:[%s485_s5 + $0x8] sm:$0xff] %v238_v17  ;;  %v223_v21 = vadd.f32 %v222_v6, %v138_v20 }
  0xfe   :  { %v239_v22 = vadd.f32 %v230_v11, %v221_v19 }
  0xff   :  { %v240_v23 = vadd.f32 %v234_v3, %v223_v21 }
 0x100   :  { %243 = vst [vmem:[%s485_s5 + $0x10] sm:$0xff] %v239_v22 }
 0x101   :  { %244 = vst [vmem:[%s485_s5 + $0x18] sm:$0xff] %v240_v23 }

// kernel: tile.23
= control target key start
LH: loop header
LB: loop body
LE: loop exit
PB: predicated region body
PF: predicated region fallthrough
CT: control target
= control target key end

     0   :  { %s28_s0 = inlined_call_operand.vmem [shape: f32[4], index: 0, kind: input, shape index: {}]   ;;  %s29_s1 = inlined_call_operand.vmem [shape: f32[16,4], index: 1, kind: output, shape index: {}]  }
   0x1   :  { %v4_v0 = vld [vmem:[%s28_s0] ss:$0 sm:$0xff] }
   0x2   :  { %5 = vst [vmem:[%s29_s1] sm:$0xff] %v4_v0  ;;  %8 = vst [vmem:[%s29_s1 + $0x8] sm:$0xff] %v4_v0 }

// kernel: tile.24
= control target key start
LH: loop header
LB: loop body
LE: loop exit
PB: predicated region body
PF: predicated region fallthrough
CT: control target
= control target key end

     0   :  { %s131_s10 = smov 60   ;;  %s132_s11 = smov 52   ;;  %vm3_vm0 = vcmask 31744   ;;  %vm9_vm1 = vcmask 523744   ;;  %vm15_vm2 = vcmask 490944   ;;  %vm21_vm3 = vcmask 458144   ;;  %s207_s0 = inlined_call_operand.vmem [shape: f32[16,4], index: 0, kind: input, shape index: {}]   ;;  %s208_s1 = inlined_call_operand.vmem [shape: f32[1,64], index: 1, kind: output, shape index: {}]  }
   0x1   :  { %v101_v0 = vld [vmem:[%s207_s0 + $0xf] sm:$0x1]   ;;  %v103_v1 = vld [vmem:[%s207_s0 + $0xd] sm:$0x1]   ;;  %v102_v2 = vld [vmem:[%s207_s0 + $0xe] sm:$0x1]  }
   0x2   :  { %7 = vrot.lane.b32.xlu0 %v101_v0, %s131_s10  ;;  %19 = vrot.lane.b32.xlu1 %v103_v1, %s132_s11  ;;  %v104_v3 = vld [vmem:[%s207_s0 + $0xc] sm:$0x1]   ;;  %s133_s16 = smov 56   ;;  %s134_s17 = smov 48   ;;  %v105_v4 = vld [vmem:[%s207_s0 + $0xb] sm:$0x1]  }
   0x3   :  { %v106_v5 = vld [vmem:[%s207_s0 + $0xa] sm:$0x1]   ;;  %v2_v6 = vld [vmem:[%s207_s0] sm:$0x1]   ;;  %s135_s24 = smov 44   ;;  %s136_s25 = smov 40  }
   0x4   :  { %4 = vst.msk [vmem:[#allocation0] sm:$0x1] %vm3_vm0, %v2_v6   ;;  %v107_v7 = vld [vmem:[%s207_s0 + $0x9] sm:$0x1]   ;;  %v108_v8 = vld [vmem:[%s207_s0 + $0x8] sm:$0x1]  }
   0x5   :  { %s137_s30 = smov 36   ;;  %s138_s2 = smov 32   ;;  %v109_v9 = vld [vmem:[%s207_s0 + $0x7] sm:$0x1]   ;;  %v110_v10 = vld [vmem:[%s207_s0 + $0x6] sm:$0x1]  }
   0x6   :  { %13 = vrot.lane.b32.xlu0 %v102_v2, %s133_s16  ;;  %25 = vrot.lane.b32.xlu1 %v104_v3, %s134_s17  ;;  %s139_s7 = smov 28   ;;  %s140_s8 = smov 24   ;;  %v111_v11 = vld [vmem:[%s207_s0 + $0x5] sm:$0x1]   ;;  %v112_v12 = vld [vmem:[%s207_s0 + $0x4] sm:$0x1]  }
   0x7   :  { %s141_s13 = smov 20   ;;  %s142_s14 = smov 16   ;;  %v113_v13 = vld [vmem:[%s207_s0 + $0x3] sm:$0x1]   ;;  %v114_v14 = vld [vmem:[%s207_s0 + $0x2] sm:$0x1]  }
   0x8   :  { %s143_s19 = smov 12   ;;  %s144_s20 = smov 8   ;;  %v115_v15 = vld [vmem:[%s207_s0 + $0x1] sm:$0x1]   ;;  %vm27_vm4 = vcmask 425344   ;;  %vm33_vm5 = vcmask 392544  }
   0x9   :  { %s145_s0 = smov 4   ;;  %vm39_vm6 = vcmask 359744   ;;  %vm45_vm7 = vcmask 326944   ;;  %vm51_vm8 = vcmask 294144   ;;  %vm57_vm9 = vcmask 261344  }
   0xa   :  { %31 = vrot.lane.b32.xlu0 %v105_v4, %s135_s24  ;;  %37 = vrot.lane.b32.xlu1 %v106_v5, %s136_s25  ;;  %vm63_vm10 = vcmask 228544   ;;  %vm69_vm11 = vcmask 195744   ;;  %vm75_vm12 = vcmask 162944   ;;  %vm81_vm13 = vcmask 130144  }
   0xb   :  { %vm87_vm14 = vcmask 97344   ;;  %vm93_vm15 = vcmask 64544  }
   0xe   :  { %43 = vrot.lane.b32.xlu0 %v107_v7, %s137_s30  ;;  %49 = vrot.lane.b32.xlu1 %v108_v8, %s138_s2 }
  0x12   :  { %55 = vrot.lane.b32.xlu0 %v109_v9, %s139_s7  ;;  %61 = vrot.lane.b32.xlu1 %v110_v10, %s140_s8 }
  0x16   :  { %67 = vrot.lane.b32.xlu0 %v111_v11, %s141_s13  ;;  %73 = vrot.lane.b32.xlu1 %v112_v12, %s142_s14 }
  0x1a   :  { %79 = vrot.lane.b32.xlu0 %v113_v13, %s143_s19  ;;  %85 = vrot.lane.b32.xlu1 %v114_v14, %s144_s20 }
  0x1e   :  { %91 = vrot.lane.b32.xlu0 %v115_v15, %s145_s0 }
  0x74   :  { %v8_v16 = vpop.permute.xlu0 %7   ;;  %v20_v17 = vpop.permute.xlu1 %19  }
  0x75   :  { %10 = vst.msk [vmem:[#allocation0] sm:$0x1] %vm9_vm1, %v8_v16  }
  0x78   :  { %v14_v18 = vpop.permute.xlu0 %13   ;;  %v26_v19 = vpop.permute.xlu1 %25  }
  0x79   :  { %16 = vst.msk [vmem:[#allocation0] sm:$0x1] %vm15_vm2, %v14_v18  }
  0x7a   :  { %22 = vst.msk [vmem:[#allocation0] sm:$0x1] %vm21_vm3, %v20_v17  }
  0x7b   :  { %28 = vst.msk [vmem:[#allocation0] sm:$0x1] %vm27_vm4, %v26_v19  }
  0x7c   :  { %v32_v20 = vpop.permute.xlu0 %31   ;;  %v38_v21 = vpop.permute.xlu1 %37  }
  0x7d   :  { %34 = vst.msk [vmem:[#allocation0] sm:$0x1] %vm33_vm5, %v32_v20  }
  0x7e   :  { %40 = vst.msk [vmem:[#allocation0] sm:$0x1] %vm39_vm6, %v38_v21  }
  0x80   :  { %v44_v22 = vpop.permute.xlu0 %43   ;;  %v50_v23 = vpop.permute.xlu1 %49  }
  0x81   :  { %46 = vst.msk [vmem:[#allocation0] sm:$0x1] %vm45_vm7, %v44_v22  }
  0x82   :  { %52 = vst.msk [vmem:[#allocation0] sm:$0x1] %vm51_vm8, %v50_v23  }
  0x84   :  { %v56_v24 = vpop.permute.xlu0 %55   ;;  %v62_v25 = vpop.permute.xlu1 %61  }
  0x85   :  { %58 = vst.msk [vmem:[#allocation0] sm:$0x1] %vm57_vm9, %v56_v24  }
  0x86   :  { %64 = vst.msk [vmem:[#allocation0] sm:$0x1] %vm63_vm10, %v62_v25  }
  0x88   :  { %v68_v26 = vpop.permute.xlu0 %67   ;;  %v74_v27 = vpop.permute.xlu1 %73  }
  0x89   :  { %70 = vst.msk [vmem:[#allocation0] sm:$0x1] %vm69_vm11, %v68_v26  }
  0x8a   :  { %76 = vst.msk [vmem:[#allocation0] sm:$0x1] %vm75_vm12, %v74_v27  }
  0x8c   :  { %v80_v28 = vpop.permute.xlu0 %79   ;;  %v86_v29 = vpop.permute.xlu1 %85  }
  0x8d   :  { %82 = vst.msk [vmem:[#allocation0] sm:$0x1] %vm81_vm13, %v80_v28  }
  0x8e   :  { %88 = vst.msk [vmem:[#allocation0] sm:$0x1] %vm87_vm14, %v86_v29  }
  0x90   :  { %v92_v30 = vpop.permute.xlu0 %91  }
  0x91   :  { %94 = vst.msk [vmem:[#allocation0] sm:$0x1] %vm93_vm15, %v92_v30  }
  0x98   :  { %v98_v31 = vld [vmem:[#allocation0] sm:$0x1] }
  0x99   :  { %100 = vst [vmem:[%s208_s1] sm:$0x1] %v98_v31 }

// kernel: upconv_forward.4
= control target key start
LH: loop header
LB: loop body
LE: loop exit
PB: predicated region body
PF: predicated region fallthrough
CT: control target
= control target key end

     0   :  { %s1088_s18 = smov 0   ;;  %s1302_s0 = inlined_call_operand.vmem [shape: f32[32,128], index: 0, kind: input, shape index: {}, may-alias: {0,1,2}]   ;;  %s1303_s1 = inlined_call_operand.vmem [shape: f32[32,128], index: 1, kind: input, shape index: {}, may-alias: {0,1,2}]   ;;  %s1304_s2 = inlined_call_operand.vmem [shape: f32[32,128], index: 2, kind: input, shape index: {}, may-alias: {0,1,2}]   ;;  %s1305_s3 = inlined_call_operand.vmem [shape: f32[3,128,64], index: 3, kind: input, shape index: {}]   ;;  %s1306_s4 = inlined_call_operand.vmem [shape: f32[1,64], index: 4, kind: input, shape index: {}]   ;;  %s1307_s5 = inlined_call_operand.vmem [shape: f32[32,64], index: 5, kind: output, shape index: {}]  }
   0x1 LB: > { %s714_s19 = sadd.s32 4294967295, %s1056_s18   ;;  %p724_p0 = scmp.ge.s32.totalorder %s1056_s18, 1  ;;  %s1056_s18 = sphi %s1088_s18, %s15_s18  }
   0x2   : > { %p238_p1 = scmp.lt.s32.totalorder %s1056_s18, 3 }
   0x4   : > { %p239_p2 = pnand %p724_p0, %p238_p1 }
   0x5   : > { %v343_v0 = vld [vmem:[%s1305_s3] sm:$0xff] (!%p239_p2)  ;;  %v344_v1 = vld [vmem:[%s1305_s3 + $0x8] sm:$0xff] (!%p239_p2)  ;;  %v345_v2 = vld [vmem:[%s1305_s3 + $0x10] sm:$0xff] (!%p239_p2)  ;;  %s1105_s26 = sshll.u32 (!%p239_p2), %s714_s19, 1  ;;  %vm326_vm0 = vcmask (!%p239_p2), 1040384   ;;  %vm333_vm1 = vcmask (!%p239_p2), 1046528  }
   0x6   : > { %242 = sbr.rel (%p239_p2) target bundleno = 292 (0x124), region = 40  ;;  %v974_v3 = vpack.c.bf16 (!%p239_p2), %v344_v1, %v343_v0  ;;  %v346_v4 = vld [vmem:[%s1305_s3 + $0x18] sm:$0xff] (!%p239_p2)  ;;  %p283_p3 = scmp.lt.s32.totalorder (!%p239_p2), %s1105_s26, 3  ;;  %v347_v6 = vld [vmem:[%s1305_s3 + $0x20] sm:$0xff] (!%p239_p2)  ;;  %v348_v7 = vld [vmem:[%s1305_s3 + $0x28] sm:$0xff] (!%p239_p2)  ;;  %vm631_vm2 = vcmask (!%p239_p2), 523264  }
   0x7   : > { %s728_s29 = sadd.s32 (!%p239_p2), 4294967295, %s1105_s26  ;;  %v978_v5 = vpack.c.bf16 (!%p239_p2), %v346_v4, %v345_v2  ;;  %v982_v8 = vpack.c.bf16 (!%p239_p2), %v348_v7, %v347_v6  ;;  %v742_v9 = vld [vmem:[%s1305_s3 + $0x80] sm:$0xff] (!%p239_p2)  ;;  %v743_v10 = vld [vmem:[%s1305_s3 + $0x88] sm:$0xff] (!%p239_p2)  ;;  %v349_v11 = vld [vmem:[%s1305_s3 + $0x30] sm:$0xff] (!%p239_p2) }
   0x8   : > { %p290_p4 = scmp.gt.s32.totalorder (!%p239_p2), %s728_s29, 0  ;;  %p729_p5 = scmp.lt.s32.totalorder (!%p239_p2), %s728_s29, 3  ;;  %975 = vmatprep.subr.bf16.mxu0 (!%p239_p2), %v974_v3  ;;  %v350_v12 = vld [vmem:[%s1305_s3 + $0x38] sm:$0xff] (!%p239_p2)  ;;  %v942_v13 = vpack.c.bf16 (!%p239_p2), %v743_v10, %v742_v9  ;;  %v744_v14 = vld [vmem:[%s1305_s3 + $0x90] sm:$0xff] (!%p239_p2)  ;;  %v746_v18 = vld [vmem:[%s1305_s3 + $0xa0] sm:$0xff] (!%p239_p2) }
   0x9   : > { %977 = vmatpush3.bf16.msra.mxu0 (!%p239_p2), %v974_v3  ;;  %v745_v16 = vld [vmem:[%s1305_s3 + $0x98] sm:$0xff] (!%p239_p2)  ;;  %v986_v19 = vpack.c.bf16 (!%p239_p2), %v350_v12, %v349_v11  ;;  %v747_v20 = vld [vmem:[%s1305_s3 + $0xa8] sm:$0xff] (!%p239_p2)  ;;  %v351_v21 = vld [vmem:[%s1305_s3 + $0x40] sm:$0xff] (!%p239_p2) }
   0xa   : > { %979 = vmatprep.subr.bf16.mxu0 (!%p239_p2), %v978_v5  ;;  %943 = vmatprep.subr.bf16.mxu1 (!%p239_p2), %v942_v13  ;;  %v946_v17 = vpack.c.bf16 (!%p239_p2), %v745_v16, %v744_v14  ;;  %v352_v22 = vld [vmem:[%s1305_s3 + $0x48] sm:$0xff] (!%p239_p2)  ;;  %v950_v24 = vpack.c.bf16 (!%p239_p2), %v747_v20, %v746_v18  ;;  %v748_v26 = vld [vmem:[%s1305_s3 + $0xb0] sm:$0xff] (!%p239_p2)  ;;  %v749_v27 = vld [vmem:[%s1305_s3 + $0xb8] sm:$0xff] (!%p239_p2) }
   0xb   : > { %945 = vmatpush3.bf16.msra.mxu1 (!%p239_p2), %v942_v13  ;;  %v990_v29 = vpack.c.bf16 (!%p239_p2), %v352_v22, %v351_v21  ;;  %v353_v30 = vld [vmem:[%s1305_s3 + $0x50] sm:$0xff] (!%p239_p2)  ;;  %v354_v31 = vld [vmem:[%s1305_s3 + $0x58] sm:$0xff] (!%p239_p2)  ;;  %v954_v33 = vpack.c.bf16 (!%p239_p2), %v749_v27, %v748_v26  ;;  %v750_v34 = vld [vmem:[%s1305_s3 + $0xc0] sm:$0xff] (!%p239_p2) }
   0xc   : > { %947 = vmatprep.subr.bf16.mxu1 (!%p239_p2), %v946_v17  ;;  %v751_v35 = vld [vmem:[%s1305_s3 + $0xc8] sm:$0xff] (!%p239_p2)  ;;  %v994_v36 = vpack.c.bf16 (!%p239_p2), %v354_v31, %v353_v30  ;;  %v355_v37 = vld [vmem:[%s1305_s3 + $0x60] sm:$0xff] (!%p239_p2)  ;;  %v752_v40 = vld [vmem:[%s1305_s3 + $0xd0] sm:$0xff] (!%p239_p2) }
   0xd   : > { %s1119_s9 = scalar_select %p283_p3, %s1105_s26, 3  ;;  %981 = vmatpush3.bf16.msra.mxu0 %v978_v5  ;;  %v356_v38 = vld [vmem:[%s1305_s3 + $0x68] sm:$0xff]  ;;  %v958_v39 = vpack.c.bf16 %v751_v35, %v750_v34  ;;  %v753_v41 = vld [vmem:[%s1305_s3 + $0xd8] sm:$0xff]  ;;  %v357_v43 = vld [vmem:[%s1305_s3 + $0x70] sm:$0xff] }
   0xe   : > { %s291_s10 = scalar_select %p290_p4, %s728_s29, 0  ;;  %983 = vmatprep.subr.bf16.mxu0 %v982_v8  ;;  %v998_v42 = vpack.c.bf16 %v356_v38, %v355_v37  ;;  %v358_v44 = vld [vmem:[%s1305_s3 + $0x78] sm:$0xff]  ;;  %v962_v45 = vpack.c.bf16 %v753_v41, %v752_v40  ;;  %v754_v46 = vld [vmem:[%s1305_s3 + $0xe0] sm:$0xff]  ;;  %v755_v47 = vld [vmem:[%s1305_s3 + $0xe8] sm:$0xff] }
   0xf   : > { %s726_s15 = sshll.u32 %s1119_s9, 3  ;;  %949 = vmatpush3.bf16.msra.mxu1 %v946_v17  ;;  %v1002_v48 = vpack.c.bf16 %v358_v44, %v357_v43  ;;  %v758_v50 = vld [vmem:[%s1305_s3 + $0x100] sm:$0xff]  ;;  %v759_v51 = vld [vmem:[%s1305_s3 + $0x108] sm:$0xff]  ;;  %v966_v52 = vpack.c.bf16 %v755_v47, %v754_v46  ;;  %v756_v53 = vld [vmem:[%s1305_s3 + $0xf0] sm:$0xff] }
  0x10   : > { %s1139_s23 = scalar_lea.vmem %s1302_s0, %s726_s15  ;;  %s1310_s10 = smov (!%p729_p5, %s291_s10), 3  ;;  %951 = vmatprep.subr.bf16.mxu1 %v950_v24  ;;  %v757_v54 = vld [vmem:[%s1305_s3 + $0xf8] sm:$0xff]  ;;  %v1006_v56 = vpack.c.bf16 %v759_v51, %v758_v50  ;;  %v760_v59 = vld [vmem:[%s1305_s3 + $0x110] sm:$0xff]  ;;  %v762_v1 = vld [vmem:[%s1305_s3 + $0x120] sm:$0xff] }
  0x11   : > { %v1146_v15 = vld [vmem:[%s1139_s23] sm:$0xff]  ;;  %s734_s7 = sshll.u32 %s1310_s10, 3  ;;  %985 = vmatpush3.bf16.msra.mxu0 %v982_v8  ;;  %v1214_v49 = vld [vmem:[%s1139_s23 + $0x8] sm:$0xff]  ;;  %v761_v60 = vld [vmem:[%s1305_s3 + $0x118] sm:$0xff]  ;;  %v970_v61 = vpack.c.bf16 %v757_v54, %v756_v53 }
  0x12   : > { %s295_s19 = scalar_lea.vmem %s1303_s1, %s734_s7  ;;  %v327_v23 = vrot.slane %v1146_v15, 7  ;;  %869 = vmatprep.mubr.f32.mxu1 %v1146_v15  ;;  %987 = vmatprep.subr.bf16.mxu0 %v986_v19  ;;  %v328_v55 = vrot.slane %v1214_v49, 7  ;;  %v334_v57 = vrot.slane %v1146_v15, 1  ;;  %v335_v58 = vrot.slane %v1214_v49, 1  ;;  %v763_v2 = vld [vmem:[%s1305_s3 + $0x128] sm:$0xff]  ;;  %v764_v4 = vld [vmem:[%s1305_s3 + $0x130] sm:$0xff]  ;;  %s316_s7 = scalar_lea.vmem %s1307_s5, %s726_s15 }
  0x13   : > { %v320_v25 = vld [vmem:[%s295_s19 + $0x7] sm:$0x1]  ;;  %953 = vmatpush3.bf16.msra.mxu1 %v950_v24  ;;  %s301_s19 = sadd.s32 2, %s1105_s26  ;;  %v1010_v63 = vpack.c.bf16 %v761_v60, %v760_v59  ;;  %v1014_v3 = vpack.c.bf16 %v763_v2, %v762_v1  ;;  %v765_v5 = vld [vmem:[%s1305_s3 + $0x138] sm:$0xff]  ;;  %v767_v8 = vld [vmem:[%s1305_s3 + $0x148] sm:$0xff] }
  0x14   : > { %v321_v28 = vmul.f32 0.0, %v320_v25  ;;  %955 = vmatprep.subr.bf16.mxu1 %v954_v33  ;;  %v329_v62 = vsel %vm326_vm0, %v327_v23, %v328_v55  ;;  %v336_v0 = vsel %vm333_vm1, %v334_v57, %v335_v58  ;;  %p1248_p6 = scmp.lt.s32.totalorder %s301_s19, 3  ;;  %v1018_v6 = vpack.c.bf16 %v765_v5, %v764_v4  ;;  %v766_v7 = vld [vmem:[%s1305_s3 + $0x140] sm:$0xff]  ;;  %v768_v10 = vld [vmem:[%s1305_s3 + $0x150] sm:$0xff]  ;;  %v769_v11 = vld [vmem:[%s1305_s3 + $0x158] sm:$0xff] }
  0x15   : > { %989 = vmatpush3.bf16.msra.mxu0 %v986_v19  ;;  %v1022_v9 = vpack.c.bf16 %v767_v8, %v766_v7  ;;  %v1026_v12 = vpack.c.bf16 %v769_v11, %v768_v10  ;;  %v770_v13 = vld [vmem:[%s1305_s3 + $0x160] sm:$0xff]  ;;  %v771_v14 = vld [vmem:[%s1305_s3 + $0x168] sm:$0xff]  ;;  %v772_v17 = vld [vmem:[%s1305_s3 + $0x170] sm:$0xff] }
  0x16   : > { %v332_v32 = vsel %vm326_vm0, %v321_v28, %v327_v23  ;;  %991 = vmatprep.subr.bf16.mxu0 %v990_v29  ;;  %s1312_s19 = smov (!%p1248_p6, %s301_s19), 3  ;;  %v1030_v15 = vpack.c.bf16 %v771_v14, %v770_v13  ;;  %v773_v18 = vld [vmem:[%s1305_s3 + $0x178] sm:$0xff]  ;;  %v774_v26 = vld [vmem:[%s1306_s4] ss:$0 sm:$0xff] }
  0x17   : > { %904 = vmatprep.mubr.f32.mxu0 %v332_v32  ;;  %957 = vmatpush3.bf16.msra.mxu1 %v954_v33  ;;  %s1314_s19 = smov (!%p1248_p6, %s1312_s19), 3  ;;  %v1034_v20 = vpack.c.bf16 %v773_v18, %v772_v17 }
  0x18   : > { %959 = vmatprep.subr.bf16.mxu1 %v958_v39  ;;  %s739_s23 = sshll.u32 %s1314_s19, 3 }
  0x19   : > { %993 = vmatpush3.bf16.msra.mxu0 %v990_v29  ;;  %s307_s22 = scalar_lea.vmem %s1304_s2, %s739_s23 }
  0x1a   : > { %995 = vmatprep.subr.bf16.mxu0 %v994_v36  ;;  %v322_v16 = vld [vmem:[%s307_s22] sm:$0x1] }
  0x1b   : > { %961 = vmatpush3.bf16.msra.mxu1 %v958_v39  ;;  %v323_v19 = vmul.f32 0.0, %v322_v16 }
  0x1c   : > { %963 = vmatprep.subr.bf16.mxu1 %v962_v45 }
  0x1d   : > { %997 = vmatpush3.bf16.msra.mxu0 %v994_v36  ;;  %v340_v21 = vrot.slane %v323_v19, 1 }
  0x1e   : > { %999 = vmatprep.subr.bf16.mxu0 %v998_v42 }
  0x1f   : > { %965 = vmatpush3.bf16.msra.mxu1 %v962_v45  ;;  %v342_v22 = vsel %vm333_vm1, %v335_v58, %v340_v21 }
  0x20   : > { %967 = vmatprep.subr.bf16.mxu1 %v966_v52 }
  0x21   : > { %1001 = vmatpush3.bf16.msra.mxu0 %v998_v42 }
  0x22   : > { %1003 = vmatprep.subr.bf16.mxu0 %v1002_v48 }
  0x23   : > { %969 = vmatpush3.bf16.msra.mxu1 %v966_v52 }
  0x24   : > { %971 = vmatprep.subr.bf16.mxu1 %v970_v61 }
  0x25   : > { %1005 = vmatpush3.bf16.msra.mxu0 %v1002_v48 }
  0x26   : > { %1007 = vmatprep.subr.bf16.mxu0 %v1006_v56 }
  0x27   : > { %973 = vmatpush3.bf16.msra.mxu1 %v970_v61 }
  0x28   : > { %905 = vmatmul.mubr.f32.vlgmr.msra.gmra.mrb[0].mxu0 %v329_v62 }
  0x29   : > { %1009 = vmatpush3.bf16.msra.mxu0 %v1006_v56  ;;  %939 = vmatprep.mubr.f32.mxu0 %v336_v0 }
  0x2a   : > { %1011 = vmatprep.subr.bf16.mxu0 %v1010_v63  ;;  %870 = vmatmul.mubr.f32.vlgmr.msra.gmra.mrb[0].mxu1 %v1214_v49 }
  0x2d   : > { %1013 = vmatpush3.bf16.msra.mxu0 %v1010_v63 }
  0x2e   : > { %1015 = vmatprep.subr.bf16.mxu0 %v1014_v3 }
  0x31   : > { %1017 = vmatpush3.bf16.msra.mxu0 %v1014_v3 }
  0x32   : > { %1019 = vmatprep.subr.bf16.mxu0 %v1018_v6 }
  0x35   : > { %1021 = vmatpush3.bf16.msra.mxu0 %v1018_v6 }
  0x36   : > { %1023 = vmatprep.subr.bf16.mxu0 %v1022_v9 }
  0x39   : > { %1025 = vmatpush3.bf16.msra.mxu0 %v1022_v9 }
  0x3a   : > { %1027 = vmatprep.subr.bf16.mxu0 %v1026_v12 }
  0x3d   : > { %1029 = vmatpush3.bf16.msra.mxu0 %v1026_v12 }
  0x3e   : > { %1031 = vmatprep.subr.bf16.mxu0 %v1030_v15 }
  0x41   : > { %1033 = vmatpush3.bf16.msra.mxu0 %v1030_v15 }
  0x42   : > { %1035 = vmatprep.subr.bf16.mxu0 %v1034_v20 }
  0x45   : > { %1037 = vmatpush3.bf16.msra.mxu0 %v1034_v20 }
  0x48   : > { %940 = vmatmul.mubr.f32.vlgmr.msra.gmra.mrb[0].mxu0 %v342_v22 }
  0xfd   : > { %v871_v23 = vpop.f32.mrb[0].mxu1 }
  0xfe   : > { %v442_v24 = vpop.f32.mrb[1].mxu1 }
 0x11b   : > { %v941_v25 = vpop.f32.mrb[0].mxu0 }
 0x11c   : > { %v1038_v27 = vadd.f32 %v941_v25, %v871_v23  ;;  %v609_v28 = vpop.f32.mrb[1].mxu0 }
 0x11d   : > { %v1039_v29 = vadd.f32 %v609_v28, %v442_v24 }
 0x11e   : > { %v628_v30 = vadd.f32 %v1038_v27, %v774_v26 }
 0x11f   : > { %v627_v31 = vadd.f32 %v1039_v29, %v774_v26 }
 0x120   : > { %v630_v33 = vmax.f32 %v628_v30, 0.0 }
 0x121   : > { %v629_v32 = vmax.f32 %v627_v31, 0.0 }
 0x122   : > { %633 = vst.msk [vmem:[%s316_s7 + $0x8] sm:$0xff] %vm631_vm2, %v630_v33 }
 0x123   : > { %632 = vst.msk [vmem:[%s316_s7] sm:$0xff] %vm631_vm2, %v629_v32 }
 0x124 PF: > { %s15_s18 = sadd.s32 1, %s1056_s18  }
 0x125   : > { %p12_p7 = scmp.ge.s32.totalorder %s15_s18, 4  }
 0x127   :  { %14 = sbr.rel (!%p12_p7) target bundleno = 1 (0x1), region = 78 }

// kernel: upconv_forward.5
= control target key start
LH: loop header
LB: loop body
LE: loop exit
PB: predicated region body
PF: predicated region fallthrough
CT: control target
= control target key end

     0   :  { %s946_s18 = smov 0   ;;  %s1081_s0 = inlined_call_operand.vmem [shape: f32[32,64], index: 0, kind: input, shape index: {}, may-alias: {0,1,2}]   ;;  %s1082_s1 = inlined_call_operand.vmem [shape: f32[32,64], index: 1, kind: input, shape index: {}, may-alias: {0,1,2}]   ;;  %s1083_s2 = inlined_call_operand.vmem [shape: f32[32,64], index: 2, kind: input, shape index: {}, may-alias: {0,1,2}]   ;;  %s1084_s3 = inlined_call_operand.vmem [shape: f32[3,64,64], index: 3, kind: input, shape index: {}]   ;;  %s1085_s4 = inlined_call_operand.vmem [shape: f32[1,64], index: 4, kind: input, shape index: {}]   ;;  %s1086_s5 = inlined_call_operand.vmem [shape: f32[32,64], index: 5, kind: output, shape index: {}]  }
   0x1 LB: > { %s702_s19 = sadd.s32 4294967295, %s914_s18   ;;  %p712_p0 = scmp.ge.s32.totalorder %s914_s18, 1  ;;  %s914_s18 = sphi %s946_s18, %s15_s18  }
   0x2   : > { %p238_p1 = scmp.lt.s32.totalorder %s914_s18, 3 }
   0x4   : > { %p239_p2 = pnand %p712_p0, %p238_p1 }
   0x5   : > { %v341_v0 = vld [vmem:[%s1084_s3] sm:$0xff] (!%p239_p2)  ;;  %v342_v1 = vld [vmem:[%s1084_s3 + $0x8] sm:$0xff] (!%p239_p2)  ;;  %v343_v2 = vld [vmem:[%s1084_s3 + $0x10] sm:$0xff] (!%p239_p2)  ;;  %s963_s26 = sshll.u32 (!%p239_p2), %s702_s19, 1  ;;  %vm358_vm0 = vcmask (!%p239_p2), 523264   ;;  %vm326_vm1 = vcmask (!%p239_p2), 1040384  }
   0x6   : > { %242 = sbr.rel (%p239_p2) target bundleno = 260 (0x104), region = 40  ;;  %v864_v3 = vpack.c.bf16 (!%p239_p2), %v342_v1, %v341_v0  ;;  %v344_v4 = vld [vmem:[%s1084_s3 + $0x18] sm:$0xff] (!%p239_p2)  ;;  %p283_p3 = scmp.lt.s32.totalorder (!%p239_p2), %s963_s26, 3  ;;  %v345_v6 = vld [vmem:[%s1084_s3 + $0x20] sm:$0xff] (!%p239_p2)  ;;  %v346_v7 = vld [vmem:[%s1084_s3 + $0x28] sm:$0xff] (!%p239_p2)  ;;  %vm332_vm2 = vcmask (!%p239_p2), 1046528  }
   0x7   : > { %s716_s29 = sadd.s32 (!%p239_p2), 4294967295, %s963_s26  ;;  %v868_v5 = vpack.c.bf16 (!%p239_p2), %v344_v4, %v343_v2  ;;  %v730_v8 = vld [vmem:[%s1084_s3 + $0x40] sm:$0xff] (!%p239_p2)  ;;  %v731_v9 = vld [vmem:[%s1084_s3 + $0x48] sm:$0xff] (!%p239_p2)  ;;  %v732_v11 = vld [vmem:[%s1084_s3 + $0x50] sm:$0xff] (!%p239_p2)  ;;  %v872_v13 = vpack.c.bf16 (!%p239_p2), %v346_v7, %v345_v6  ;;  %s301_s25 = sadd.s32 (!%p239_p2), 2, %s963_s26 }
   0x8   : > { %p290_p4 = scmp.gt.s32.totalorder (!%p239_p2), %s716_s29, 0  ;;  %p717_p5 = scmp.lt.s32.totalorder (!%p239_p2), %s716_s29, 3  ;;  %865 = vmatprep.subr.bf16.mxu0 (!%p239_p2), %v864_v3  ;;  %v848_v10 = vpack.c.bf16 (!%p239_p2), %v731_v9, %v730_v8  ;;  %v733_v12 = vld [vmem:[%s1084_s3 + $0x58] sm:$0xff] (!%p239_p2)  ;;  %v734_v15 = vld [vmem:[%s1084_s3 + $0x60] sm:$0xff] (!%p239_p2)  ;;  %v735_v16 = vld [vmem:[%s1084_s3 + $0x68] sm:$0xff] (!%p239_p2) }
   0x9   : > { %867 = vmatpush3.bf16.msra.mxu0 (!%p239_p2), %v864_v3  ;;  %v852_v14 = vpack.c.bf16 (!%p239_p2), %v733_v12, %v732_v11  ;;  %v347_v17 = vld [vmem:[%s1084_s3 + $0x30] sm:$0xff] (!%p239_p2)  ;;  %v348_v18 = vld [vmem:[%s1084_s3 + $0x38] sm:$0xff] (!%p239_p2)  ;;  %p1010_p6 = scmp.lt.s32.totalorder (!%p239_p2), %s301_s25, 3  ;;  %v856_v20 = vpack.c.bf16 (!%p239_p2), %v735_v16, %v734_v15  ;;  %v742_v26 = vld [vmem:[%s1084_s3 + $0x80] sm:$0xff] (!%p239_p2) }
   0xa   : > { %869 = vmatprep.subr.bf16.mxu0 (!%p239_p2), %v868_v5  ;;  %849 = vmatprep.subr.bf16.mxu1 (!%p239_p2), %v848_v10  ;;  %v876_v21 = vpack.c.bf16 (!%p239_p2), %v348_v18, %v347_v17  ;;  %v736_v23 = vld [vmem:[%s1084_s3 + $0x70] sm:$0xff] (!%p239_p2)  ;;  %v737_v24 = vld [vmem:[%s1084_s3 + $0x78] sm:$0xff] (!%p239_p2)  ;;  %v743_v27 = vld [vmem:[%s1084_s3 + $0x88] sm:$0xff] (!%p239_p2) }
   0xb   : > { %851 = vmatpush3.bf16.msra.mxu1 (!%p239_p2), %v848_v10  ;;  %v860_v31 = vpack.c.bf16 (!%p239_p2), %v737_v24, %v736_v23  ;;  %v880_v32 = vpack.c.bf16 (!%p239_p2), %v743_v27, %v742_v26  ;;  %v744_v36 = vld [vmem:[%s1084_s3 + $0x90] sm:$0xff] (!%p239_p2)  ;;  %v745_v37 = vld [vmem:[%s1084_s3 + $0x98] sm:$0xff] (!%p239_p2)  ;;  %v746_v41 = vld [vmem:[%s1084_s3 + $0xa0] sm:$0xff] (!%p239_p2) }
   0xc   : > { %853 = vmatprep.subr.bf16.mxu1 (!%p239_p2), %v852_v14  ;;  %v884_v39 = vpack.c.bf16 (!%p239_p2), %v745_v37, %v744_v36  ;;  %v747_v42 = vld [vmem:[%s1084_s3 + $0xa8] sm:$0xff] (!%p239_p2)  ;;  %v748_v45 = vld [vmem:[%s1084_s3 + $0xb0] sm:$0xff] (!%p239_p2)  ;;  %v749_v46 = vld [vmem:[%s1084_s3 + $0xb8] sm:$0xff] (!%p239_p2) }
   0xd   : > { %s983_s13 = scalar_select %p283_p3, %s963_s26, 3  ;;  %871 = vmatpush3.bf16.msra.mxu0 %v868_v5  ;;  %v888_v43 = vpack.c.bf16 %v747_v42, %v746_v41  ;;  %v892_v48 = vpack.c.bf16 %v749_v46, %v748_v45  ;;  %v752_v54 = vld [vmem:[%s1085_s4] ss:$0 sm:$0xff] }
   0xe   : > { %s291_s14 = scalar_select %p290_p4, %s716_s29, 0  ;;  %873 = vmatprep.subr.bf16.mxu0 %v872_v13 }
   0xf   : > { %s714_s20 = sshll.u32 %s983_s13, 3  ;;  %s1091_s25 = smov (!%p1010_p6, %s301_s25), 3  ;;  %855 = vmatpush3.bf16.msra.mxu1 %v852_v14 }
  0x10   : > { %s286_s9 = scalar_lea.vmem %s1081_s0, %s714_s20  ;;  %s1089_s14 = smov (!%p717_p5, %s291_s14), 3  ;;  %857 = vmatprep.subr.bf16.mxu1 %v856_v20 }
  0x11   : > { %v318_v19 = vld [vmem:[%s286_s9] sm:$0xff]  ;;  %s722_s26 = sshll.u32 %s1089_s14, 3  ;;  %v319_v22 = vld [vmem:[%s286_s9 + $0x8] sm:$0xff]  ;;  %s1093_s25 = smov (!%p1010_p6, %s1091_s25), 3  ;;  %875 = vmatpush3.bf16.msra.mxu0 %v872_v13 }
  0x12   : > { %807 = vmatprep.mubr.msk.f32.mxu1 %vm358_vm0, %v318_v19  ;;  %s295_s19 = scalar_lea.vmem %s1082_s1, %s722_s26  ;;  %v327_v25 = vrot.slane %v318_v19, 7  ;;  %v328_v30 = vrot.slane %v319_v22, 7  ;;  %877 = vmatprep.subr.bf16.mxu0 %v876_v21  ;;  %v333_v33 = vrot.slane %v318_v19, 1  ;;  %v334_v34 = vrot.slane %v319_v22, 1  ;;  %s727_s6 = sshll.u32 %s1093_s25, 3 }
  0x13   : > { %v320_v28 = vld [vmem:[%s295_s19 + $0x7] sm:$0x1]  ;;  %859 = vmatpush3.bf16.msra.mxu1 %v856_v20  ;;  %s307_s25 = scalar_lea.vmem %s1083_s2, %s727_s6  ;;  %s316_s14 = scalar_lea.vmem %s1086_s5, %s714_s20 }
  0x14   : > { %v321_v29 = vmul.f32 0.0, %v320_v28  ;;  %v329_v38 = vsel %vm326_vm1, %v327_v25, %v328_v30  ;;  %861 = vmatprep.subr.bf16.mxu1 %v860_v31  ;;  %v335_v40 = vsel %vm332_vm2, %v333_v33, %v334_v34  ;;  %v322_v44 = vld [vmem:[%s307_s25] sm:$0x1] }
  0x15   : > { %879 = vmatpush3.bf16.msra.mxu0 %v876_v21  ;;  %v323_v47 = vmul.f32 0.0, %v322_v44 }
  0x16   : > { %v331_v35 = vsel %vm326_vm1, %v321_v29, %v327_v25  ;;  %881 = vmatprep.subr.bf16.mxu0 %v880_v32 }
  0x17   : > { %826 = vmatprep.mubr.msk.f32.mxu0 %vm358_vm0, %v331_v35  ;;  %863 = vmatpush3.bf16.msra.mxu1 %v860_v31  ;;  %v338_v49 = vrot.slane %v323_v47, 1 }
  0x18   : > { %827 = vmatmul.mubr.msk.f32.vlgmr.msra.gmra.mrb[0].mxu0 %vm358_vm0, %v329_v38 }
  0x19   : > { %883 = vmatpush3.bf16.msra.mxu0 %v880_v32  ;;  %845 = vmatprep.mubr.msk.f32.mxu0 %vm358_vm0, %v335_v40  ;;  %v340_v50 = vsel %vm332_vm2, %v334_v34, %v338_v49 }
  0x1a   : > { %885 = vmatprep.subr.bf16.mxu0 %v884_v39  ;;  %808 = vmatmul.mubr.msk.f32.vlgmr.msra.gmra.mrb[0].mxu1 %vm358_vm0, %v319_v22 }
  0x1d   : > { %887 = vmatpush3.bf16.msra.mxu0 %v884_v39 }
  0x1e   : > { %889 = vmatprep.subr.bf16.mxu0 %v888_v43 }
  0x21   : > { %891 = vmatpush3.bf16.msra.mxu0 %v888_v43 }
  0x22   : > { %893 = vmatprep.subr.bf16.mxu0 %v892_v48 }
  0x25   : > { %895 = vmatpush3.bf16.msra.mxu0 %v892_v48 }
  0x28   : > { %846 = vmatmul.mubr.msk.f32.vlgmr.msra.gmra.mrb[0].mxu0 %vm358_vm0, %v340_v50 }
  0xed   : > { %v809_v51 = vpop.f32.mrb[0].mxu1 }
  0xee   : > { %v429_v52 = vpop.f32.mrb[1].mxu1 }
  0xfb   : > { %v847_v53 = vpop.f32.mrb[0].mxu0 }
  0xfc   : > { %v896_v55 = vadd.f32 %v847_v53, %v809_v51  ;;  %v598_v56 = vpop.f32.mrb[1].mxu0 }
  0xfd   : > { %v897_v57 = vadd.f32 %v598_v56, %v429_v52 }
  0xfe   : > { %v617_v58 = vadd.f32 %v896_v55, %v752_v54 }
  0xff   : > { %v616_v59 = vadd.f32 %v897_v57, %v752_v54 }
 0x100   : > { %v619_v61 = vmax.f32 %v617_v58, 0.0 }
 0x101   : > { %v618_v60 = vmax.f32 %v616_v59, 0.0 }
 0x102   : > { %621 = vst.msk [vmem:[%s316_s14 + $0x8] sm:$0xff] %vm358_vm0, %v619_v61 }
 0x103   : > { %620 = vst.msk [vmem:[%s316_s14] sm:$0xff] %vm358_vm0, %v618_v60 }
 0x104 PF: > { %s15_s18 = sadd.s32 1, %s914_s18  }
 0x105   : > { %p12_p7 = scmp.ge.s32.totalorder %s15_s18, 4  }
 0x107   :  { %14 = sbr.rel (!%p12_p7) target bundleno = 1 (0x1), region = 78 }

</bundles_post_ra>
